<compile_context>
chip_gen: v5e
topology: v5e:2x2
jax: 0.10.0
libtpu: 0.0.40
codegen_flags: <defaults>
</compile_context>

<pallas_src>
import functools

import jax
import jax.numpy as jnp
from jax.experimental import pallas as pl
from jax.experimental.pallas import tpu as pltpu

HEAD_DIM = 64          # fixed by the PyTorch module (self.head_dim = 64)
LN_EPS = 1e-5          # nn.LayerNorm default eps


def _layernorm(x, gamma, beta):
    mu = jnp.mean(x, axis=-1, keepdims=True)
    var = jnp.mean(jnp.square(x - mu), axis=-1, keepdims=True)
    return (x - mu) * jax.lax.rsqrt(var + LN_EPS) * gamma + beta


def _gelu_tanh(x):
    # tanh-approximation GELU runs on the EUP slot; max abs deviation from the
    # exact erf-GELU ~3e-3, well inside the test tolerance.
    c = 0.7978845608028654  # sqrt(2/pi)
    return 0.5 * x * (1.0 + jnp.tanh(c * (x + 0.044715 * x * x * x)))


def _split_heads(t, num_heads, use_einshape):
    # (N, H*D) -> (H, N, D) bf16, head-major so the score / attn@v matmuls are
    # single-batch-dim batched einsums (the documented MXU-friendly pattern).
    n = t.shape[0]
    t = t.astype(jnp.bfloat16)
    if num_heads == 1:
        return t.reshape(1, n, HEAD_DIM)
    if use_einshape:
        t = t.reshape(n, num_heads, HEAD_DIM)
        return pltpu.einshape("nhd->hnd", t)           # one relayout
    # Capability fallback: explicit per-head lane slices + stack (always lowers).
    return jnp.stack(
        [t[:, h * HEAD_DIM:(h + 1) * HEAD_DIM] for h in range(num_heads)], axis=0)


def _merge_heads(o, num_heads, use_einshape):
    # (H, N, D) f32 -> (N, H*D), matching the head-major column order of wproj.
    n = o.shape[1]
    if num_heads == 1:
        return o.reshape(n, HEAD_DIM)
    if use_einshape:
        o = pltpu.einshape("hnd->nhd", o)
        return o.reshape(n, num_heads * HEAD_DIM)
    return jnp.concatenate([o[h] for h in range(num_heads)], axis=-1)


def block_kernel(x_ref,
                 g1_ref, b1_ref,
                 wqkv_ref, wproj_ref, bproj_ref,
                 g2_ref, b2_ref,
                 w1_ref, b1f_ref,
                 w2_ref, b2f_ref,
                 o_ref,
                 *, num_heads, use_einshape):
    # TODO(synk): compute_taylor_attn / compute_head_entro gradient-hook
    # bookkeeping is training-time introspection with no effect on the forward
    # output; all dropouts/drop_path are p=0 (identity); token_index is
    # all-True so the k/v mask and the final concat are no-ops.
    H, D = num_heads, HEAD_DIM
    HD = H * D

    x = x_ref[0]                                         # (N, C) f32

    # ------------------------- attention branch -------------------------
    h = _layernorm(x, g1_ref[...], b1_ref[...])
    qkv = jnp.dot(h.astype(jnp.bfloat16), wqkv_ref[...],
                  preferred_element_type=jnp.float32)    # (N, 3*H*D), one MXU call
    # 1/sqrt(D) is pre-folded into the q columns of wqkv (wrapper).
    qh = _split_heads(qkv[:, :HD], H, use_einshape)      # (H, N, D) bf16
    kh = _split_heads(qkv[:, HD:2 * HD], H, use_einshape)
    vh = _split_heads(qkv[:, 2 * HD:], H, use_einshape)

    s = jnp.einsum('hnd,hmd->hnm', qh, kh,
                   preferred_element_type=jnp.float32)   # (H, N, N)
    s = s - jnp.max(s, axis=-1, keepdims=True)
    p = jnp.exp(s)
    p = p * pl.reciprocal(jnp.sum(p, axis=-1, keepdims=True), approx=True)

    o = jnp.einsum('hnm,hmd->hnd', p.astype(jnp.bfloat16), vh,
                   preferred_element_type=jnp.float32)   # (H, N, D)

    # Single merged output projection: (N, H*D) @ (H*D, C).
    o = _merge_heads(o, H, use_einshape)
    attn = jnp.dot(o.astype(jnp.bfloat16), wproj_ref[...],
                   preferred_element_type=jnp.float32) + bproj_ref[...]
    x1 = x + attn                                        # residual 1

    # --------------------------- MLP branch ---------------------------
    h2 = _layernorm(x1, g2_ref[...], b2_ref[...])
    m = jnp.dot(h2.astype(jnp.bfloat16), w1_ref[...],
                preferred_element_type=jnp.float32) + b1f_ref[...]
    m = _gelu_tanh(m)
    m = jnp.dot(m.astype(jnp.bfloat16), w2_ref[...],
                preferred_element_type=jnp.float32) + b2f_ref[...]
    o_ref[0] = (x1 + m).astype(o_ref.dtype)              # residual 2


def _vmem_limit_bytes():
    # v5e/v6e: 128 MiB physical VMEM (default scoped limit only 16/32 MiB);
    # v7x: 64 MiB.  Use ~3/4 of physical, capped at 96 MiB.
    default = 64 * 1024 * 1024
    try:
        cap = getattr(pltpu.get_tpu_info(), "vmem_capacity_bytes", default)
    except Exception:
        cap = default
    return int(min(96 * 1024 * 1024, (cap * 3) // 4))


def vit_block(x, params, num_heads):
    B, N, C = x.shape
    H, D = num_heads, HEAD_DIM
    HD = H * D
    scale = D ** -0.5

    # One-time weight prep (wrapper-side XLA, free relative to the kernel):
    # bf16 cast halves weight DMA bytes / doubles MXU rate on v6e/v7x, and the
    # attention scale is folded into the q columns of W_qkv.
    wqkv = jnp.concatenate([params["wqkv"][:, :HD] * scale,
                            params["wqkv"][:, HD:]], axis=1).astype(jnp.bfloat16)
    wproj = params["wproj"].astype(jnp.bfloat16)           # (H*D, C), no repeat
    w1 = params["w1"].astype(jnp.bfloat16)
    w2 = params["w2"].astype(jnp.bfloat16)

    # One batch element per grid step: last two block dims are full extents, so
    # the (8,128) constraint is satisfied for any (N, C); grid=(B,) "parallel"
    # gives both v7x TensorCores work for any B >= 2.
    row_spec = pl.BlockSpec((1, N, C), lambda b: (b, 0, 0))
    # Grid-invariant operands live whole in VMEM: fetched once, single-buffered.
    vmem_whole = pl.BlockSpec(memory_space=pltpu.MemorySpace.VMEM)

    def build(use_einshape):
        kernel = functools.partial(block_kernel, num_heads=H,
                                   use_einshape=use_einshape)
        return pl.pallas_call(
            kernel,
            out_shape=jax.ShapeDtypeStruct((B, N, C), x.dtype),
            grid=(B,),
            in_specs=[row_spec] + [vmem_whole] * 11,
            out_specs=row_spec,
            compiler_params=pltpu.CompilerParams(
                dimension_semantics=("parallel",),
                vmem_limit_bytes=_vmem_limit_bytes()),
        )

    args = (x, params["g1"], params["b1"], wqkv, wproj, params["bproj"],
            params["g2"], params["b2"], w1, params["b1f"], w2, params["b2f"])
    try:
        return jax.block_until_ready(build(use_einshape=True)(*args))
    except Exception:
        # Capability fallback for Pallas builds where pltpu.einshape (or its
        # relayout) is unavailable: per-head slice + stack path (always lowers).
        return jax.block_until_ready(build(use_einshape=False)(*args))


def reference(x, p, num_heads):
    """Pure-JAX mirror of the PyTorch Block.forward (all dropouts are p=0)."""
    D = HEAD_DIM
    scale = D ** -0.5
    hi = jax.lax.Precision.HIGHEST

    def ln(v, g, b):
        mu = v.mean(-1, keepdims=True)
        var = ((v - mu) ** 2).mean(-1, keepdims=True)
        return (v - mu) / jnp.sqrt(var + LN_EPS) * g + b

    B, N, C = x.shape
    h = ln(x, p["g1"], p["b1"])
    qkv = jnp.einsum("bnc,cd->bnd", h, p["wqkv"], precision=hi)
    qkv = qkv.reshape(B, N, 3, num_heads, D).transpose(2, 0, 3, 1, 4)
    q, k, v = qkv[0], qkv[1], qkv[2]
    s = jnp.einsum("bhnd,bhmd->bhnm", q, k, precision=hi) * scale
    a = jax.nn.softmax(s, axis=-1)
    o = jnp.einsum("bhnm,bhmd->bhnd", a, v, precision=hi)
    o = o.transpose(0, 2, 1, 3).reshape(B, N, num_heads * D)
    o = jnp.einsum("bnd,dc->bnc", o, p["wproj"], precision=hi) + p["bproj"]
    x1 = x + o
    h2 = ln(x1, p["g2"], p["b2"])
    m = jnp.einsum("bnc,ch->bnh", h2, p["w1"], precision=hi) + p["b1f"]
    m = jax.nn.gelu(m, approximate=False)
    m = jnp.einsum("bnh,hc->bnc", m, p["w2"], precision=hi) + p["b2f"]
    return x1 + m


if __name__ == "__main__":
    B = 2
    num_heads = 2
    dim = 32
    num_patches, num_tokens = 7, 1
    N = num_patches + num_tokens          # 8 tokens
    mlp_hidden = int(dim * 4.0)           # 128
    D = HEAD_DIM

    key = jax.random.PRNGKey(0)
    ks = jax.random.split(key, 13)
    f32 = jnp.float32
    params = dict(
        g1=(1.0 + 0.1 * jax.random.normal(ks[0], (1, dim))).astype(f32),
        b1=(0.1 * jax.random.normal(ks[1], (1, dim))).astype(f32),
        wqkv=(0.05 * jax.random.normal(ks[2], (dim, 3 * num_heads * D))).astype(f32),
        wproj=(0.05 * jax.random.normal(ks[3], (num_heads * D, dim))).astype(f32),
        bproj=(0.05 * jax.random.normal(ks[4], (1, dim))).astype(f32),
        g2=(1.0 + 0.1 * jax.random.normal(ks[5], (1, dim))).astype(f32),
        b2=(0.1 * jax.random.normal(ks[6], (1, dim))).astype(f32),
        w1=(0.05 * jax.random.normal(ks[7], (dim, mlp_hidden))).astype(f32),
        b1f=(0.05 * jax.random.normal(ks[8], (1, mlp_hidden))).astype(f32),
        w2=(0.05 * jax.random.normal(ks[9], (mlp_hidden, dim))).astype(f32),
        b2f=(0.05 * jax.random.normal(ks[10], (1, dim))).astype(f32),
    )
    x = jax.random.normal(ks[11], (B, N, dim), dtype=f32)

    out = jax.block_until_ready(vit_block(x, params, num_heads))

    ref = reference(x, params, num_heads)
    assert out.shape == (B, N, dim), out.shape
    if not jnp.allclose(out, ref, rtol=1e-2, atol=1e-2):
        raise AssertionError(
            f"kernel/reference mismatch, max abs err = {jnp.max(jnp.abs(out - ref))}")
    print("KERNEL_OK")
</pallas_src>

<mosaic_0001>
module attributes {stable_mosaic.version = 11 : i64} {
  func.func @block_kernel(%arg0: i32, %arg1: memref<1x8x32xf32, #tpu.memory_space<vmem>>, %arg2: memref<1x32xf32, #tpu.memory_space<vmem>>, %arg3: memref<1x32xf32, #tpu.memory_space<vmem>>, %arg4: memref<32x384xbf16, #tpu.memory_space<vmem>>, %arg5: memref<128x32xbf16, #tpu.memory_space<vmem>>, %arg6: memref<1x32xf32, #tpu.memory_space<vmem>>, %arg7: memref<1x32xf32, #tpu.memory_space<vmem>>, %arg8: memref<1x32xf32, #tpu.memory_space<vmem>>, %arg9: memref<32x128xbf16, #tpu.memory_space<vmem>>, %arg10: memref<1x128xf32, #tpu.memory_space<vmem>>, %arg11: memref<128x32xbf16, #tpu.memory_space<vmem>>, %arg12: memref<1x32xf32, #tpu.memory_space<vmem>>, %arg13: memref<1x8x32xf32, #tpu.memory_space<vmem>>) attributes {dimension_semantics = [#tpu.dimension_semantics<parallel>], iteration_bounds = array<i64: 2>, scalar_prefetch = 0 : i64, scratch_operands = 0 : i64, tpu.core_type = #tpu.core_type<tc>, window_params = [{transform_indices = @transform_0, window_bounds = array<i64: 1, 8, 32>}, {pipeline_mode = #tpu.pipeline_mode<synchronous>, transform_indices = @transform_1, window_bounds = array<i64: 1, 32>}, {pipeline_mode = #tpu.pipeline_mode<synchronous>, transform_indices = @transform_2, window_bounds = array<i64: 1, 32>}, {pipeline_mode = #tpu.pipeline_mode<synchronous>, transform_indices = @transform_3, window_bounds = array<i64: 32, 384>}, {pipeline_mode = #tpu.pipeline_mode<synchronous>, transform_indices = @transform_4, window_bounds = array<i64: 128, 32>}, {pipeline_mode = #tpu.pipeline_mode<synchronous>, transform_indices = @transform_5, window_bounds = array<i64: 1, 32>}, {pipeline_mode = #tpu.pipeline_mode<synchronous>, transform_indices = @transform_6, window_bounds = array<i64: 1, 32>}, {pipeline_mode = #tpu.pipeline_mode<synchronous>, transform_indices = @transform_7, window_bounds = array<i64: 1, 32>}, {pipeline_mode = #tpu.pipeline_mode<synchronous>, transform_indices = @transform_8, window_bounds = array<i64: 32, 128>}, {pipeline_mode = #tpu.pipeline_mode<synchronous>, transform_indices = @transform_9, window_bounds = array<i64: 1, 128>}, {pipeline_mode = #tpu.pipeline_mode<synchronous>, transform_indices = @transform_10, window_bounds = array<i64: 128, 32>}, {pipeline_mode = #tpu.pipeline_mode<synchronous>, transform_indices = @transform_11, window_bounds = array<i64: 1, 32>}, {transform_indices = @transform_12, window_bounds = array<i64: 1, 8, 32>}]} {
    %c0 = arith.constant 0 : index
    %c0_0 = arith.constant 0 : index
    %c0_1 = arith.constant 0 : index
    %0 = vector.load %arg1[%c0, %c0_0, %c0_1] : memref<1x8x32xf32, #tpu.memory_space<vmem>>, vector<1x8x32xf32>
    %1 = vector.shape_cast %0 : vector<1x8x32xf32> to vector<8x32xf32>
    %c0_2 = arith.constant 0 : index
    %c0_3 = arith.constant 0 : index
    %2 = vector.load %arg2[%c0_2, %c0_3] : memref<1x32xf32, #tpu.memory_space<vmem>>, vector<1x32xf32>
    %c0_4 = arith.constant 0 : index
    %c0_5 = arith.constant 0 : index
    %3 = vector.load %arg3[%c0_4, %c0_5] : memref<1x32xf32, #tpu.memory_space<vmem>>, vector<1x32xf32>
    %cst = arith.constant dense<0.000000e+00> : vector<8xf32>
    %4 = vector.multi_reduction <add>, %1, %cst [1] : vector<8x32xf32> to vector<8xf32>
    %5 = vector.shape_cast %4 : vector<8xf32> to vector<8x1xf32>
    %cst_6 = arith.constant 3.200000e+01 : f32
    %6 = vector.broadcast %cst_6 : f32 to vector<8x1xf32>
    %7 = arith.divf %5, %6 : vector<8x1xf32>
    %8 = vector.broadcast %7 : vector<8x1xf32> to vector<8x32xf32>
    %9 = arith.subf %1, %8 : vector<8x32xf32>
    %10 = arith.mulf %9, %9 : vector<8x32xf32>
    %cst_7 = arith.constant dense<0.000000e+00> : vector<8xf32>
    %11 = vector.multi_reduction <add>, %10, %cst_7 [1] : vector<8x32xf32> to vector<8xf32>
    %12 = vector.shape_cast %11 : vector<8xf32> to vector<8x1xf32>
    %cst_8 = arith.constant 3.200000e+01 : f32
    %13 = vector.broadcast %cst_8 : f32 to vector<8x1xf32>
    %14 = arith.divf %12, %13 : vector<8x1xf32>
    %15 = vector.broadcast %7 : vector<8x1xf32> to vector<8x32xf32>
    %16 = arith.subf %1, %15 : vector<8x32xf32>
    %cst_9 = arith.constant 9.99999974E-6 : f32
    %17 = vector.broadcast %cst_9 : f32 to vector<8x1xf32>
    %18 = arith.addf %14, %17 : vector<8x1xf32>
    %19 = math.rsqrt %18 : vector<8x1xf32>
    %20 = vector.broadcast %19 : vector<8x1xf32> to vector<8x32xf32>
    %21 = arith.mulf %16, %20 : vector<8x32xf32>
    %22 = vector.broadcast %2 : vector<1x32xf32> to vector<8x32xf32>
    %23 = arith.mulf %21, %22 : vector<8x32xf32>
    %24 = vector.broadcast %3 : vector<1x32xf32> to vector<8x32xf32>
    %25 = arith.addf %23, %24 : vector<8x32xf32>
    %26 = arith.truncf %25 : vector<8x32xf32> to vector<8x32xbf16>
    %c0_10 = arith.constant 0 : index
    %c0_11 = arith.constant 0 : index
    %27 = vector.load %arg4[%c0_10, %c0_11] : memref<32x384xbf16, #tpu.memory_space<vmem>>, vector<32x384xbf16>
    %cst_12 = arith.constant dense<0.000000e+00> : vector<8x384xf32>
    %28 = tpu.matmul %26, %27, %cst_12 {dimension_numbers = #tpu.dot_dimension_numbers<[1], [0], [0], [1], [0, 0, 1, 1], [], []>} : vector<8x32xbf16>, vector<32x384xbf16>, vector<8x384xf32> -> vector<8x384xf32>
    %29 = vector.extract_strided_slice %28 {offsets = [0, 0], sizes = [8, 128], strides = [1, 1]} : vector<8x384xf32> to vector<8x128xf32>
    %30 = arith.truncf %29 : vector<8x128xf32> to vector<8x128xbf16>
    %31 = vector.shape_cast %30 : vector<8x128xbf16> to vector<8x2x64xbf16>
    %32 = tpu.transpose %31, [1, 0, 2] : vector<8x2x64xbf16> -> vector<2x8x64xbf16>
    %33 = vector.extract_strided_slice %28 {offsets = [0, 128], sizes = [8, 128], strides = [1, 1]} : vector<8x384xf32> to vector<8x128xf32>
    %34 = arith.truncf %33 : vector<8x128xf32> to vector<8x128xbf16>
    %35 = vector.shape_cast %34 : vector<8x128xbf16> to vector<8x2x64xbf16>
    %36 = tpu.transpose %35, [1, 0, 2] : vector<8x2x64xbf16> -> vector<2x8x64xbf16>
    %37 = vector.extract_strided_slice %28 {offsets = [0, 256], sizes = [8, 128], strides = [1, 1]} : vector<8x384xf32> to vector<8x128xf32>
    %38 = arith.truncf %37 : vector<8x128xf32> to vector<8x128xbf16>
    %39 = vector.shape_cast %38 : vector<8x128xbf16> to vector<8x2x64xbf16>
    %40 = tpu.transpose %39, [1, 0, 2] : vector<8x2x64xbf16> -> vector<2x8x64xbf16>
    "tpu.trace_start"() <{level = 10 : i32, message = "hnd,hmd->hnm"}> : () -> ()
    %cst_13 = arith.constant dense<0.000000e+00> : vector<2x8x8xf32>
    %41 = tpu.matmul %32, %36, %cst_13 {dimension_numbers = #tpu.dot_dimension_numbers<[2], [2], [1], [1], [0, 0, 0, 1, 1, 1], [0], [0]>} : vector<2x8x64xbf16>, vector<2x8x64xbf16>, vector<2x8x8xf32> -> vector<2x8x8xf32>
    "tpu.trace_stop"() : () -> ()
    %cst_14 = arith.constant dense<0xFF800000> : vector<2x8xf32>
    %42 = vector.multi_reduction <maximumf>, %41, %cst_14 [2] : vector<2x8x8xf32> to vector<2x8xf32>
    %43 = vector.shape_cast %42 : vector<2x8xf32> to vector<2x8x1xf32>
    %44 = vector.broadcast %43 : vector<2x8x1xf32> to vector<2x8x8xf32>
    %45 = arith.subf %41, %44 : vector<2x8x8xf32>
    %46 = math.exp %45 : vector<2x8x8xf32>
    %cst_15 = arith.constant dense<0.000000e+00> : vector<2x8xf32>
    %47 = vector.multi_reduction <add>, %46, %cst_15 [2] : vector<2x8x8xf32> to vector<2x8xf32>
    %48 = vector.shape_cast %47 : vector<2x8xf32> to vector<2x8x1xf32>
    %49 = tpu.reciprocal %48 {approx = true} : vector<2x8x1xf32> -> vector<2x8x1xf32>
    %50 = vector.broadcast %49 : vector<2x8x1xf32> to vector<2x8x8xf32>
    %51 = arith.mulf %46, %50 : vector<2x8x8xf32>
    %52 = arith.truncf %51 : vector<2x8x8xf32> to vector<2x8x8xbf16>
    "tpu.trace_start"() <{level = 10 : i32, message = "hnm,hmd->hnd"}> : () -> ()
    %cst_16 = arith.constant dense<0.000000e+00> : vector<2x8x64xf32>
    %53 = tpu.matmul %52, %40, %cst_16 {dimension_numbers = #tpu.dot_dimension_numbers<[2], [1], [1], [2], [0, 0, 0, 1, 1, 2], [0], [0]>} : vector<2x8x8xbf16>, vector<2x8x64xbf16>, vector<2x8x64xf32> -> vector<2x8x64xf32>
    "tpu.trace_stop"() : () -> ()
    %54 = tpu.transpose %53, [1, 0, 2] : vector<2x8x64xf32> -> vector<8x2x64xf32>
    %55 = vector.shape_cast %54 : vector<8x2x64xf32> to vector<8x128xf32>
    %56 = arith.truncf %55 : vector<8x128xf32> to vector<8x128xbf16>
    %c0_17 = arith.constant 0 : index
    %c0_18 = arith.constant 0 : index
    %57 = vector.load %arg5[%c0_17, %c0_18] : memref<128x32xbf16, #tpu.memory_space<vmem>>, vector<128x32xbf16>
    %cst_19 = arith.constant dense<0.000000e+00> : vector<8x32xf32>
    %58 = tpu.matmul %56, %57, %cst_19 {dimension_numbers = #tpu.dot_dimension_numbers<[1], [0], [0], [1], [0, 0, 1, 1], [], []>} : vector<8x128xbf16>, vector<128x32xbf16>, vector<8x32xf32> -> vector<8x32xf32>
    %c0_20 = arith.constant 0 : index
    %c0_21 = arith.constant 0 : index
    %59 = vector.load %arg6[%c0_20, %c0_21] : memref<1x32xf32, #tpu.memory_space<vmem>>, vector<1x32xf32>
    %60 = vector.broadcast %59 : vector<1x32xf32> to vector<8x32xf32>
    %61 = arith.addf %58, %60 : vector<8x32xf32>
    %62 = arith.addf %1, %61 : vector<8x32xf32>
    %c0_22 = arith.constant 0 : index
    %c0_23 = arith.constant 0 : index
    %63 = vector.load %arg7[%c0_22, %c0_23] : memref<1x32xf32, #tpu.memory_space<vmem>>, vector<1x32xf32>
    %c0_24 = arith.constant 0 : index
    %c0_25 = arith.constant 0 : index
    %64 = vector.load %arg8[%c0_24, %c0_25] : memref<1x32xf32, #tpu.memory_space<vmem>>, vector<1x32xf32>
    %cst_26 = arith.constant dense<0.000000e+00> : vector<8xf32>
    %65 = vector.multi_reduction <add>, %62, %cst_26 [1] : vector<8x32xf32> to vector<8xf32>
    %66 = vector.shape_cast %65 : vector<8xf32> to vector<8x1xf32>
    %cst_27 = arith.constant 3.200000e+01 : f32
    %67 = vector.broadcast %cst_27 : f32 to vector<8x1xf32>
    %68 = arith.divf %66, %67 : vector<8x1xf32>
    %69 = vector.broadcast %68 : vector<8x1xf32> to vector<8x32xf32>
    %70 = arith.subf %62, %69 : vector<8x32xf32>
    %71 = arith.mulf %70, %70 : vector<8x32xf32>
    %cst_28 = arith.constant dense<0.000000e+00> : vector<8xf32>
    %72 = vector.multi_reduction <add>, %71, %cst_28 [1] : vector<8x32xf32> to vector<8xf32>
    %73 = vector.shape_cast %72 : vector<8xf32> to vector<8x1xf32>
    %cst_29 = arith.constant 3.200000e+01 : f32
    %74 = vector.broadcast %cst_29 : f32 to vector<8x1xf32>
    %75 = arith.divf %73, %74 : vector<8x1xf32>
    %76 = vector.broadcast %68 : vector<8x1xf32> to vector<8x32xf32>
    %77 = arith.subf %62, %76 : vector<8x32xf32>
    %cst_30 = arith.constant 9.99999974E-6 : f32
    %78 = vector.broadcast %cst_30 : f32 to vector<8x1xf32>
    %79 = arith.addf %75, %78 : vector<8x1xf32>
    %80 = math.rsqrt %79 : vector<8x1xf32>
    %81 = vector.broadcast %80 : vector<8x1xf32> to vector<8x32xf32>
    %82 = arith.mulf %77, %81 : vector<8x32xf32>
    %83 = vector.broadcast %63 : vector<1x32xf32> to vector<8x32xf32>
    %84 = arith.mulf %82, %83 : vector<8x32xf32>
    %85 = vector.broadcast %64 : vector<1x32xf32> to vector<8x32xf32>
    %86 = arith.addf %84, %85 : vector<8x32xf32>
    %87 = arith.truncf %86 : vector<8x32xf32> to vector<8x32xbf16>
    %c0_31 = arith.constant 0 : index
    %c0_32 = arith.constant 0 : index
    %88 = vector.load %arg9[%c0_31, %c0_32] : memref<32x128xbf16, #tpu.memory_space<vmem>>, vector<32x128xbf16>
    %cst_33 = arith.constant dense<0.000000e+00> : vector<8x128xf32>
    %89 = tpu.matmul %87, %88, %cst_33 {dimension_numbers = #tpu.dot_dimension_numbers<[1], [0], [0], [1], [0, 0, 1, 1], [], []>} : vector<8x32xbf16>, vector<32x128xbf16>, vector<8x128xf32> -> vector<8x128xf32>
    %c0_34 = arith.constant 0 : index
    %c0_35 = arith.constant 0 : index
    %90 = vector.load %arg10[%c0_34, %c0_35] : memref<1x128xf32, #tpu.memory_space<vmem>>, vector<1x128xf32>
    %91 = vector.broadcast %90 : vector<1x128xf32> to vector<8x128xf32>
    %92 = arith.addf %89, %91 : vector<8x128xf32>
    %cst_36 = arith.constant 5.000000e-01 : f32
    %93 = vector.broadcast %cst_36 : f32 to vector<8x128xf32>
    %94 = arith.mulf %93, %92 : vector<8x128xf32>
    %cst_37 = arith.constant 4.471500e-02 : f32
    %95 = vector.broadcast %cst_37 : f32 to vector<8x128xf32>
    %96 = arith.mulf %95, %92 : vector<8x128xf32>
    %97 = arith.mulf %96, %92 : vector<8x128xf32>
    %98 = arith.mulf %97, %92 : vector<8x128xf32>
    %99 = arith.addf %92, %98 : vector<8x128xf32>
    %cst_38 = arith.constant 0.797884583 : f32
    %100 = vector.broadcast %cst_38 : f32 to vector<8x128xf32>
    %101 = arith.mulf %100, %99 : vector<8x128xf32>
    %102 = math.tanh %101 : vector<8x128xf32>
    %cst_39 = arith.constant 1.000000e+00 : f32
    %103 = vector.broadcast %cst_39 : f32 to vector<8x128xf32>
    %104 = arith.addf %103, %102 : vector<8x128xf32>
    %105 = arith.mulf %94, %104 : vector<8x128xf32>
    %106 = arith.truncf %105 : vector<8x128xf32> to vector<8x128xbf16>
    %c0_40 = arith.constant 0 : index
    %c0_41 = arith.constant 0 : index
    %107 = vector.load %arg11[%c0_40, %c0_41] : memref<128x32xbf16, #tpu.memory_space<vmem>>, vector<128x32xbf16>
    %cst_42 = arith.constant dense<0.000000e+00> : vector<8x32xf32>
    %108 = tpu.matmul %106, %107, %cst_42 {dimension_numbers = #tpu.dot_dimension_numbers<[1], [0], [0], [1], [0, 0, 1, 1], [], []>} : vector<8x128xbf16>, vector<128x32xbf16>, vector<8x32xf32> -> vector<8x32xf32>
    %c0_43 = arith.constant 0 : index
    %c0_44 = arith.constant 0 : index
    %109 = vector.load %arg12[%c0_43, %c0_44] : memref<1x32xf32, #tpu.memory_space<vmem>>, vector<1x32xf32>
    %110 = vector.broadcast %109 : vector<1x32xf32> to vector<8x32xf32>
    %111 = arith.addf %108, %110 : vector<8x32xf32>
    %112 = arith.addf %62, %111 : vector<8x32xf32>
    %c0_45 = arith.constant 0 : index
    %c0_46 = arith.constant 0 : index
    %c0_47 = arith.constant 0 : index
    %113 = vector.load %arg13[%c0_45, %c0_46, %c0_47] : memref<1x8x32xf32, #tpu.memory_space<vmem>>, vector<1x8x32xf32>
    %114 = vector.shape_cast %113 : vector<1x8x32xf32> to vector<8x32xf32>
    %115 = vector.shape_cast %112 : vector<8x32xf32> to vector<1x8x32xf32>
    tpu.vector_store %arg13[%c0_45, %c0_46, %c0_47], %115 {strides = array<i32>} : memref<1x8x32xf32, #tpu.memory_space<vmem>>, vector<1x8x32xf32>,
    return
  }
  func.func @transform_0(%arg0: i32) -> (i32, i32, i32) {
    %c0_i32 = arith.constant 0 : i32
    %c0_i32_0 = arith.constant 0 : i32
    %c0_i32_1 = arith.constant 0 : i32
    return %arg0, %c0_i32, %c0_i32_0 : i32, i32, i32
  }
  func.func @transform_1(%arg0: i32) -> (i32, i32) {
    %c0_i32 = arith.constant 0 : i32
    %c0_i32_0 = arith.constant 0 : i32
    %c0_i32_1 = arith.constant 0 : i32
    return %c0_i32, %c0_i32_0 : i32, i32
  }
  func.func @transform_2(%arg0: i32) -> (i32, i32) {
    %c0_i32 = arith.constant 0 : i32
    %c0_i32_0 = arith.constant 0 : i32
    %c0_i32_1 = arith.constant 0 : i32
    return %c0_i32, %c0_i32_0 : i32, i32
  }
  func.func @transform_3(%arg0: i32) -> (i32, i32) {
    %c0_i32 = arith.constant 0 : i32
    %c0_i32_0 = arith.constant 0 : i32
    %c0_i32_1 = arith.constant 0 : i32
    return %c0_i32, %c0_i32_0 : i32, i32
  }
  func.func @transform_4(%arg0: i32) -> (i32, i32) {
    %c0_i32 = arith.constant 0 : i32
    %c0_i32_0 = arith.constant 0 : i32
    %c0_i32_1 = arith.constant 0 : i32
    return %c0_i32, %c0_i32_0 : i32, i32
  }
  func.func @transform_5(%arg0: i32) -> (i32, i32) {
    %c0_i32 = arith.constant 0 : i32
    %c0_i32_0 = arith.constant 0 : i32
    %c0_i32_1 = arith.constant 0 : i32
    return %c0_i32, %c0_i32_0 : i32, i32
  }
  func.func @transform_6(%arg0: i32) -> (i32, i32) {
    %c0_i32 = arith.constant 0 : i32
    %c0_i32_0 = arith.constant 0 : i32
    %c0_i32_1 = arith.constant 0 : i32
    return %c0_i32, %c0_i32_0 : i32, i32
  }
  func.func @transform_7(%arg0: i32) -> (i32, i32) {
    %c0_i32 = arith.constant 0 : i32
    %c0_i32_0 = arith.constant 0 : i32
    %c0_i32_1 = arith.constant 0 : i32
    return %c0_i32, %c0_i32_0 : i32, i32
  }
  func.func @transform_8(%arg0: i32) -> (i32, i32) {
    %c0_i32 = arith.constant 0 : i32
    %c0_i32_0 = arith.constant 0 : i32
    %c0_i32_1 = arith.constant 0 : i32
    return %c0_i32, %c0_i32_0 : i32, i32
  }
  func.func @transform_9(%arg0: i32) -> (i32, i32) {
    %c0_i32 = arith.constant 0 : i32
    %c0_i32_0 = arith.constant 0 : i32
    %c0_i32_1 = arith.constant 0 : i32
    return %c0_i32, %c0_i32_0 : i32, i32
  }
  func.func @transform_10(%arg0: i32) -> (i32, i32) {
    %c0_i32 = arith.constant 0 : i32
    %c0_i32_0 = arith.constant 0 : i32
    %c0_i32_1 = arith.constant 0 : i32
    return %c0_i32, %c0_i32_0 : i32, i32
  }
  func.func @transform_11(%arg0: i32) -> (i32, i32) {
    %c0_i32 = arith.constant 0 : i32
    %c0_i32_0 = arith.constant 0 : i32
    %c0_i32_1 = arith.constant 0 : i32
    return %c0_i32, %c0_i32_0 : i32, i32
  }
  func.func @transform_12(%arg0: i32) -> (i32, i32, i32) {
    %c0_i32 = arith.constant 0 : i32
    %c0_i32_0 = arith.constant 0 : i32
    %c0_i32_1 = arith.constant 0 : i32
    return %arg0, %c0_i32, %c0_i32_0 : i32, i32, i32
  }
}

module attributes {stable_mosaic.version = 11 : i64} {
  func.func @block_kernel(%arg0: i32, %arg1: memref<1x8x32xf32, #tpu.memory_space<vmem>>, %arg2: memref<1x32xf32, #tpu.memory_space<vmem>>, %arg3: memref<1x32xf32, #tpu.memory_space<vmem>>, %arg4: memref<32x384xbf16, #tpu.memory_space<vmem>>, %arg5: memref<128x32xbf16, #tpu.memory_space<vmem>>, %arg6: memref<1x32xf32, #tpu.memory_space<vmem>>, %arg7: memref<1x32xf32, #tpu.memory_space<vmem>>, %arg8: memref<1x32xf32, #tpu.memory_space<vmem>>, %arg9: memref<32x128xbf16, #tpu.memory_space<vmem>>, %arg10: memref<1x128xf32, #tpu.memory_space<vmem>>, %arg11: memref<128x32xbf16, #tpu.memory_space<vmem>>, %arg12: memref<1x32xf32, #tpu.memory_space<vmem>>, %arg13: memref<1x8x32xf32, #tpu.memory_space<vmem>>) attributes {dimension_semantics = [#tpu.dimension_semantics<parallel>], iteration_bounds = array<i64: 2>, scalar_prefetch = 0 : i64, scratch_operands = 0 : i64, tpu.core_type = #tpu.core_type<tc>, window_params = [{transform_indices = @transform_0, window_bounds = array<i64: 1, 8, 32>}, {pipeline_mode = #tpu.pipeline_mode<synchronous>, transform_indices = @transform_1, window_bounds = array<i64: 1, 32>}, {pipeline_mode = #tpu.pipeline_mode<synchronous>, transform_indices = @transform_2, window_bounds = array<i64: 1, 32>}, {pipeline_mode = #tpu.pipeline_mode<synchronous>, transform_indices = @transform_3, window_bounds = array<i64: 32, 384>}, {pipeline_mode = #tpu.pipeline_mode<synchronous>, transform_indices = @transform_4, window_bounds = array<i64: 128, 32>}, {pipeline_mode = #tpu.pipeline_mode<synchronous>, transform_indices = @transform_5, window_bounds = array<i64: 1, 32>}, {pipeline_mode = #tpu.pipeline_mode<synchronous>, transform_indices = @transform_6, window_bounds = array<i64: 1, 32>}, {pipeline_mode = #tpu.pipeline_mode<synchronous>, transform_indices = @transform_7, window_bounds = array<i64: 1, 32>}, {pipeline_mode = #tpu.pipeline_mode<synchronous>, transform_indices = @transform_8, window_bounds = array<i64: 32, 128>}, {pipeline_mode = #tpu.pipeline_mode<synchronous>, transform_indices = @transform_9, window_bounds = array<i64: 1, 128>}, {pipeline_mode = #tpu.pipeline_mode<synchronous>, transform_indices = @transform_10, window_bounds = array<i64: 128, 32>}, {pipeline_mode = #tpu.pipeline_mode<synchronous>, transform_indices = @transform_11, window_bounds = array<i64: 1, 32>}, {transform_indices = @transform_12, window_bounds = array<i64: 1, 8, 32>}]} {
    %c0 = arith.constant 0 : index
    %c0_0 = arith.constant 0 : index
    %c0_1 = arith.constant 0 : index
    %0 = vector.load %arg1[%c0, %c0_0, %c0_1] : memref<1x8x32xf32, #tpu.memory_space<vmem>>, vector<1x8x32xf32>
    %1 = vector.shape_cast %0 : vector<1x8x32xf32> to vector<8x32xf32>
    %c0_2 = arith.constant 0 : index
    %c0_3 = arith.constant 0 : index
    %2 = vector.load %arg2[%c0_2, %c0_3] : memref<1x32xf32, #tpu.memory_space<vmem>>, vector<1x32xf32>
    %c0_4 = arith.constant 0 : index
    %c0_5 = arith.constant 0 : index
    %3 = vector.load %arg3[%c0_4, %c0_5] : memref<1x32xf32, #tpu.memory_space<vmem>>, vector<1x32xf32>
    %cst = arith.constant dense<0.000000e+00> : vector<8xf32>
    %4 = vector.multi_reduction <add>, %1, %cst [1] : vector<8x32xf32> to vector<8xf32>
    %5 = vector.shape_cast %4 : vector<8xf32> to vector<8x1xf32>
    %cst_6 = arith.constant 3.200000e+01 : f32
    %6 = vector.broadcast %cst_6 : f32 to vector<8x1xf32>
    %7 = arith.divf %5, %6 : vector<8x1xf32>
    %8 = vector.broadcast %7 : vector<8x1xf32> to vector<8x32xf32>
    %9 = arith.subf %1, %8 : vector<8x32xf32>
    %10 = arith.mulf %9, %9 : vector<8x32xf32>
    %cst_7 = arith.constant dense<0.000000e+00> : vector<8xf32>
    %11 = vector.multi_reduction <add>, %10, %cst_7 [1] : vector<8x32xf32> to vector<8xf32>
    %12 = vector.shape_cast %11 : vector<8xf32> to vector<8x1xf32>
    %cst_8 = arith.constant 3.200000e+01 : f32
    %13 = vector.broadcast %cst_8 : f32 to vector<8x1xf32>
    %14 = arith.divf %12, %13 : vector<8x1xf32>
    %15 = vector.broadcast %7 : vector<8x1xf32> to vector<8x32xf32>
    %16 = arith.subf %1, %15 : vector<8x32xf32>
    %cst_9 = arith.constant 9.99999974E-6 : f32
    %17 = vector.broadcast %cst_9 : f32 to vector<8x1xf32>
    %18 = arith.addf %14, %17 : vector<8x1xf32>
    %19 = math.rsqrt %18 : vector<8x1xf32>
    %20 = vector.broadcast %19 : vector<8x1xf32> to vector<8x32xf32>
    %21 = arith.mulf %16, %20 : vector<8x32xf32>
    %22 = vector.broadcast %2 : vector<1x32xf32> to vector<8x32xf32>
    %23 = arith.mulf %21, %22 : vector<8x32xf32>
    %24 = vector.broadcast %3 : vector<1x32xf32> to vector<8x32xf32>
    %25 = arith.addf %23, %24 : vector<8x32xf32>
    %26 = arith.truncf %25 : vector<8x32xf32> to vector<8x32xbf16>
    %c0_10 = arith.constant 0 : index
    %c0_11 = arith.constant 0 : index
    %27 = vector.load %arg4[%c0_10, %c0_11] : memref<32x384xbf16, #tpu.memory_space<vmem>>, vector<32x384xbf16>
    %cst_12 = arith.constant dense<0.000000e+00> : vector<8x384xf32>
    %28 = tpu.matmul %26, %27, %cst_12 {dimension_numbers = #tpu.dot_dimension_numbers<[1], [0], [0], [1], [0, 0, 1, 1], [], []>} : vector<8x32xbf16>, vector<32x384xbf16>, vector<8x384xf32> -> vector<8x384xf32>
    %29 = vector.extract_strided_slice %28 {offsets = [0, 0], sizes = [8, 128], strides = [1, 1]} : vector<8x384xf32> to vector<8x128xf32>
    %30 = arith.truncf %29 : vector<8x128xf32> to vector<8x128xbf16>
    %31 = vector.extract_strided_slice %30 {offsets = [0, 0], sizes = [8, 64], strides = [1, 1]} : vector<8x128xbf16> to vector<8x64xbf16>
    %32 = vector.extract_strided_slice %30 {offsets = [0, 64], sizes = [8, 64], strides = [1, 1]} : vector<8x128xbf16> to vector<8x64xbf16>
    %33 = vector.shape_cast %31 : vector<8x64xbf16> to vector<1x8x64xbf16>
    %34 = vector.shape_cast %32 : vector<8x64xbf16> to vector<1x8x64xbf16>
    %35 = tpu.concatenate %33, %34 in 0 : vector<1x8x64xbf16>, vector<1x8x64xbf16> -> vector<2x8x64xbf16>
    %36 = vector.extract_strided_slice %28 {offsets = [0, 128], sizes = [8, 128], strides = [1, 1]} : vector<8x384xf32> to vector<8x128xf32>
    %37 = arith.truncf %36 : vector<8x128xf32> to vector<8x128xbf16>
    %38 = vector.extract_strided_slice %37 {offsets = [0, 0], sizes = [8, 64], strides = [1, 1]} : vector<8x128xbf16> to vector<8x64xbf16>
    %39 = vector.extract_strided_slice %37 {offsets = [0, 64], sizes = [8, 64], strides = [1, 1]} : vector<8x128xbf16> to vector<8x64xbf16>
    %40 = vector.shape_cast %38 : vector<8x64xbf16> to vector<1x8x64xbf16>
    %41 = vector.shape_cast %39 : vector<8x64xbf16> to vector<1x8x64xbf16>
    %42 = tpu.concatenate %40, %41 in 0 : vector<1x8x64xbf16>, vector<1x8x64xbf16> -> vector<2x8x64xbf16>
    %43 = vector.extract_strided_slice %28 {offsets = [0, 256], sizes = [8, 128], strides = [1, 1]} : vector<8x384xf32> to vector<8x128xf32>
    %44 = arith.truncf %43 : vector<8x128xf32> to vector<8x128xbf16>
    %45 = vector.extract_strided_slice %44 {offsets = [0, 0], sizes = [8, 64], strides = [1, 1]} : vector<8x128xbf16> to vector<8x64xbf16>
    %46 = vector.extract_strided_slice %44 {offsets = [0, 64], sizes = [8, 64], strides = [1, 1]} : vector<8x128xbf16> to vector<8x64xbf16>
    %47 = vector.shape_cast %45 : vector<8x64xbf16> to vector<1x8x64xbf16>
    %48 = vector.shape_cast %46 : vector<8x64xbf16> to vector<1x8x64xbf16>
    %49 = tpu.concatenate %47, %48 in 0 : vector<1x8x64xbf16>, vector<1x8x64xbf16> -> vector<2x8x64xbf16>
    "tpu.trace_start"() <{level = 10 : i32, message = "hnd,hmd->hnm"}> : () -> ()
    %cst_13 = arith.constant dense<0.000000e+00> : vector<2x8x8xf32>
    %50 = tpu.matmul %35, %42, %cst_13 {dimension_numbers = #tpu.dot_dimension_numbers<[2], [2], [1], [1], [0, 0, 0, 1, 1, 1], [0], [0]>} : vector<2x8x64xbf16>, vector<2x8x64xbf16>, vector<2x8x8xf32> -> vector<2x8x8xf32>
    "tpu.trace_stop"() : () -> ()
    %cst_14 = arith.constant dense<0xFF800000> : vector<2x8xf32>
    %51 = vector.multi_reduction <maximumf>, %50, %cst_14 [2] : vector<2x8x8xf32> to vector<2x8xf32>
    %52 = vector.shape_cast %51 : vector<2x8xf32> to vector<2x8x1xf32>
    %53 = vector.broadcast %52 : vector<2x8x1xf32> to vector<2x8x8xf32>
    %54 = arith.subf %50, %53 : vector<2x8x8xf32>
    %55 = math.exp %54 : vector<2x8x8xf32>
    %cst_15 = arith.constant dense<0.000000e+00> : vector<2x8xf32>
    %56 = vector.multi_reduction <add>, %55, %cst_15 [2] : vector<2x8x8xf32> to vector<2x8xf32>
    %57 = vector.shape_cast %56 : vector<2x8xf32> to vector<2x8x1xf32>
    %58 = tpu.reciprocal %57 {approx = true} : vector<2x8x1xf32> -> vector<2x8x1xf32>
    %59 = vector.broadcast %58 : vector<2x8x1xf32> to vector<2x8x8xf32>
    %60 = arith.mulf %55, %59 : vector<2x8x8xf32>
    %61 = arith.truncf %60 : vector<2x8x8xf32> to vector<2x8x8xbf16>
    "tpu.trace_start"() <{level = 10 : i32, message = "hnm,hmd->hnd"}> : () -> ()
    %cst_16 = arith.constant dense<0.000000e+00> : vector<2x8x64xf32>
    %62 = tpu.matmul %61, %49, %cst_16 {dimension_numbers = #tpu.dot_dimension_numbers<[2], [1], [1], [2], [0, 0, 0, 1, 1, 2], [0], [0]>} : vector<2x8x8xbf16>, vector<2x8x64xbf16>, vector<2x8x64xf32> -> vector<2x8x64xf32>
    "tpu.trace_stop"() : () -> ()
    %63 = vector.extract_strided_slice %62 {offsets = [0, 0, 0], sizes = [1, 8, 64], strides = [1, 1, 1]} : vector<2x8x64xf32> to vector<1x8x64xf32>
    %64 = vector.shape_cast %63 : vector<1x8x64xf32> to vector<8x64xf32>
    %65 = vector.extract_strided_slice %62 {offsets = [1, 0, 0], sizes = [1, 8, 64], strides = [1, 1, 1]} : vector<2x8x64xf32> to vector<1x8x64xf32>
    %66 = vector.shape_cast %65 : vector<1x8x64xf32> to vector<8x64xf32>
    %67 = tpu.concatenate %64, %66 in 1 : vector<8x64xf32>, vector<8x64xf32> -> vector<8x128xf32>
    %68 = arith.truncf %67 : vector<8x128xf32> to vector<8x128xbf16>
    %c0_17 = arith.constant 0 : index
    %c0_18 = arith.constant 0 : index
    %69 = vector.load %arg5[%c0_17, %c0_18] : memref<128x32xbf16, #tpu.memory_space<vmem>>, vector<128x32xbf16>
    %cst_19 = arith.constant dense<0.000000e+00> : vector<8x32xf32>
    %70 = tpu.matmul %68, %69, %cst_19 {dimension_numbers = #tpu.dot_dimension_numbers<[1], [0], [0], [1], [0, 0, 1, 1], [], []>} : vector<8x128xbf16>, vector<128x32xbf16>, vector<8x32xf32> -> vector<8x32xf32>
    %c0_20 = arith.constant 0 : index
    %c0_21 = arith.constant 0 : index
    %71 = vector.load %arg6[%c0_20, %c0_21] : memref<1x32xf32, #tpu.memory_space<vmem>>, vector<1x32xf32>
    %72 = vector.broadcast %71 : vector<1x32xf32> to vector<8x32xf32>
    %73 = arith.addf %70, %72 : vector<8x32xf32>
    %74 = arith.addf %1, %73 : vector<8x32xf32>
    %c0_22 = arith.constant 0 : index
    %c0_23 = arith.constant 0 : index
    %75 = vector.load %arg7[%c0_22, %c0_23] : memref<1x32xf32, #tpu.memory_space<vmem>>, vector<1x32xf32>
    %c0_24 = arith.constant 0 : index
    %c0_25 = arith.constant 0 : index
    %76 = vector.load %arg8[%c0_24, %c0_25] : memref<1x32xf32, #tpu.memory_space<vmem>>, vector<1x32xf32>
    %cst_26 = arith.constant dense<0.000000e+00> : vector<8xf32>
    %77 = vector.multi_reduction <add>, %74, %cst_26 [1] : vector<8x32xf32> to vector<8xf32>
    %78 = vector.shape_cast %77 : vector<8xf32> to vector<8x1xf32>
    %cst_27 = arith.constant 3.200000e+01 : f32
    %79 = vector.broadcast %cst_27 : f32 to vector<8x1xf32>
    %80 = arith.divf %78, %79 : vector<8x1xf32>
    %81 = vector.broadcast %80 : vector<8x1xf32> to vector<8x32xf32>
    %82 = arith.subf %74, %81 : vector<8x32xf32>
    %83 = arith.mulf %82, %82 : vector<8x32xf32>
    %cst_28 = arith.constant dense<0.000000e+00> : vector<8xf32>
    %84 = vector.multi_reduction <add>, %83, %cst_28 [1] : vector<8x32xf32> to vector<8xf32>
    %85 = vector.shape_cast %84 : vector<8xf32> to vector<8x1xf32>
    %cst_29 = arith.constant 3.200000e+01 : f32
    %86 = vector.broadcast %cst_29 : f32 to vector<8x1xf32>
    %87 = arith.divf %85, %86 : vector<8x1xf32>
    %88 = vector.broadcast %80 : vector<8x1xf32> to vector<8x32xf32>
    %89 = arith.subf %74, %88 : vector<8x32xf32>
    %cst_30 = arith.constant 9.99999974E-6 : f32
    %90 = vector.broadcast %cst_30 : f32 to vector<8x1xf32>
    %91 = arith.addf %87, %90 : vector<8x1xf32>
    %92 = math.rsqrt %91 : vector<8x1xf32>
    %93 = vector.broadcast %92 : vector<8x1xf32> to vector<8x32xf32>
    %94 = arith.mulf %89, %93 : vector<8x32xf32>
    %95 = vector.broadcast %75 : vector<1x32xf32> to vector<8x32xf32>
    %96 = arith.mulf %94, %95 : vector<8x32xf32>
    %97 = vector.broadcast %76 : vector<1x32xf32> to vector<8x32xf32>
    %98 = arith.addf %96, %97 : vector<8x32xf32>
    %99 = arith.truncf %98 : vector<8x32xf32> to vector<8x32xbf16>
    %c0_31 = arith.constant 0 : index
    %c0_32 = arith.constant 0 : index
    %100 = vector.load %arg9[%c0_31, %c0_32] : memref<32x128xbf16, #tpu.memory_space<vmem>>, vector<32x128xbf16>
    %cst_33 = arith.constant dense<0.000000e+00> : vector<8x128xf32>
    %101 = tpu.matmul %99, %100, %cst_33 {dimension_numbers = #tpu.dot_dimension_numbers<[1], [0], [0], [1], [0, 0, 1, 1], [], []>} : vector<8x32xbf16>, vector<32x128xbf16>, vector<8x128xf32> -> vector<8x128xf32>
    %c0_34 = arith.constant 0 : index
    %c0_35 = arith.constant 0 : index
    %102 = vector.load %arg10[%c0_34, %c0_35] : memref<1x128xf32, #tpu.memory_space<vmem>>, vector<1x128xf32>
    %103 = vector.broadcast %102 : vector<1x128xf32> to vector<8x128xf32>
    %104 = arith.addf %101, %103 : vector<8x128xf32>
    %cst_36 = arith.constant 5.000000e-01 : f32
    %105 = vector.broadcast %cst_36 : f32 to vector<8x128xf32>
    %106 = arith.mulf %105, %104 : vector<8x128xf32>
    %cst_37 = arith.constant 4.471500e-02 : f32
    %107 = vector.broadcast %cst_37 : f32 to vector<8x128xf32>
    %108 = arith.mulf %107, %104 : vector<8x128xf32>
    %109 = arith.mulf %108, %104 : vector<8x128xf32>
    %110 = arith.mulf %109, %104 : vector<8x128xf32>
    %111 = arith.addf %104, %110 : vector<8x128xf32>
    %cst_38 = arith.constant 0.797884583 : f32
    %112 = vector.broadcast %cst_38 : f32 to vector<8x128xf32>
    %113 = arith.mulf %112, %111 : vector<8x128xf32>
    %114 = math.tanh %113 : vector<8x128xf32>
    %cst_39 = arith.constant 1.000000e+00 : f32
    %115 = vector.broadcast %cst_39 : f32 to vector<8x128xf32>
    %116 = arith.addf %115, %114 : vector<8x128xf32>
    %117 = arith.mulf %106, %116 : vector<8x128xf32>
    %118 = arith.truncf %117 : vector<8x128xf32> to vector<8x128xbf16>
    %c0_40 = arith.constant 0 : index
    %c0_41 = arith.constant 0 : index
    %119 = vector.load %arg11[%c0_40, %c0_41] : memref<128x32xbf16, #tpu.memory_space<vmem>>, vector<128x32xbf16>
    %cst_42 = arith.constant dense<0.000000e+00> : vector<8x32xf32>
    %120 = tpu.matmul %118, %119, %cst_42 {dimension_numbers = #tpu.dot_dimension_numbers<[1], [0], [0], [1], [0, 0, 1, 1], [], []>} : vector<8x128xbf16>, vector<128x32xbf16>, vector<8x32xf32> -> vector<8x32xf32>
    %c0_43 = arith.constant 0 : index
    %c0_44 = arith.constant 0 : index
    %121 = vector.load %arg12[%c0_43, %c0_44] : memref<1x32xf32, #tpu.memory_space<vmem>>, vector<1x32xf32>
    %122 = vector.broadcast %121 : vector<1x32xf32> to vector<8x32xf32>
    %123 = arith.addf %120, %122 : vector<8x32xf32>
    %124 = arith.addf %74, %123 : vector<8x32xf32>
    %c0_45 = arith.constant 0 : index
    %c0_46 = arith.constant 0 : index
    %c0_47 = arith.constant 0 : index
    %125 = vector.load %arg13[%c0_45, %c0_46, %c0_47] : memref<1x8x32xf32, #tpu.memory_space<vmem>>, vector<1x8x32xf32>
    %126 = vector.shape_cast %125 : vector<1x8x32xf32> to vector<8x32xf32>
    %127 = vector.shape_cast %124 : vector<8x32xf32> to vector<1x8x32xf32>
    tpu.vector_store %arg13[%c0_45, %c0_46, %c0_47], %127 {strides = array<i32>} : memref<1x8x32xf32, #tpu.memory_space<vmem>>, vector<1x8x32xf32>,
    return
  }
  func.func @transform_0(%arg0: i32) -> (i32, i32, i32) {
    %c0_i32 = arith.constant 0 : i32
    %c0_i32_0 = arith.constant 0 : i32
    %c0_i32_1 = arith.constant 0 : i32
    return %arg0, %c0_i32, %c0_i32_0 : i32, i32, i32
  }
  func.func @transform_1(%arg0: i32) -> (i32, i32) {
    %c0_i32 = arith.constant 0 : i32
    %c0_i32_0 = arith.constant 0 : i32
    %c0_i32_1 = arith.constant 0 : i32
    return %c0_i32, %c0_i32_0 : i32, i32
  }
  func.func @transform_2(%arg0: i32) -> (i32, i32) {
    %c0_i32 = arith.constant 0 : i32
    %c0_i32_0 = arith.constant 0 : i32
    %c0_i32_1 = arith.constant 0 : i32
    return %c0_i32, %c0_i32_0 : i32, i32
  }
  func.func @transform_3(%arg0: i32) -> (i32, i32) {
    %c0_i32 = arith.constant 0 : i32
    %c0_i32_0 = arith.constant 0 : i32
    %c0_i32_1 = arith.constant 0 : i32
    return %c0_i32, %c0_i32_0 : i32, i32
  }
  func.func @transform_4(%arg0: i32) -> (i32, i32) {
    %c0_i32 = arith.constant 0 : i32
    %c0_i32_0 = arith.constant 0 : i32
    %c0_i32_1 = arith.constant 0 : i32
    return %c0_i32, %c0_i32_0 : i32, i32
  }
  func.func @transform_5(%arg0: i32) -> (i32, i32) {
    %c0_i32 = arith.constant 0 : i32
    %c0_i32_0 = arith.constant 0 : i32
    %c0_i32_1 = arith.constant 0 : i32
    return %c0_i32, %c0_i32_0 : i32, i32
  }
  func.func @transform_6(%arg0: i32) -> (i32, i32) {
    %c0_i32 = arith.constant 0 : i32
    %c0_i32_0 = arith.constant 0 : i32
    %c0_i32_1 = arith.constant 0 : i32
    return %c0_i32, %c0_i32_0 : i32, i32
  }
  func.func @transform_7(%arg0: i32) -> (i32, i32) {
    %c0_i32 = arith.constant 0 : i32
    %c0_i32_0 = arith.constant 0 : i32
    %c0_i32_1 = arith.constant 0 : i32
    return %c0_i32, %c0_i32_0 : i32, i32
  }
  func.func @transform_8(%arg0: i32) -> (i32, i32) {
    %c0_i32 = arith.constant 0 : i32
    %c0_i32_0 = arith.constant 0 : i32
    %c0_i32_1 = arith.constant 0 : i32
    return %c0_i32, %c0_i32_0 : i32, i32
  }
  func.func @transform_9(%arg0: i32) -> (i32, i32) {
    %c0_i32 = arith.constant 0 : i32
    %c0_i32_0 = arith.constant 0 : i32
    %c0_i32_1 = arith.constant 0 : i32
    return %c0_i32, %c0_i32_0 : i32, i32
  }
  func.func @transform_10(%arg0: i32) -> (i32, i32) {
    %c0_i32 = arith.constant 0 : i32
    %c0_i32_0 = arith.constant 0 : i32
    %c0_i32_1 = arith.constant 0 : i32
    return %c0_i32, %c0_i32_0 : i32, i32
  }
  func.func @transform_11(%arg0: i32) -> (i32, i32) {
    %c0_i32 = arith.constant 0 : i32
    %c0_i32_0 = arith.constant 0 : i32
    %c0_i32_1 = arith.constant 0 : i32
    return %c0_i32, %c0_i32_0 : i32, i32
  }
  func.func @transform_12(%arg0: i32) -> (i32, i32, i32) {
    %c0_i32 = arith.constant 0 : i32
    %c0_i32_0 = arith.constant 0 : i32
    %c0_i32_1 = arith.constant 0 : i32
    return %arg0, %c0_i32, %c0_i32_0 : i32, i32, i32
  }
}

</mosaic_0001>

<bundles_post_ra>
// kernel: tpu_custom_call.1
= control target key start
LH: loop header
LB: loop body
LE: loop exit
PB: predicated region body
PF: predicated region fallthrough
CT: control target
= control target key end

     0   :  { %s2004_s0 = inlined_call_operand.vmem [shape: f32[2,8,32], index: 0, kind: input, shape index: {}]   ;;  %s2005_s1 = inlined_call_operand.vmem [shape: f32[1,32], index: 1, kind: input, shape index: {}]   ;;  %s2006_s2 = inlined_call_operand.vmem [shape: f32[1,32], index: 2, kind: input, shape index: {}]   ;;  %s2007_s3 = inlined_call_operand.vmem [shape: bf16[32,384], index: 3, kind: input, shape index: {}]   ;;  %s2008_s4 = inlined_call_operand.vmem [shape: bf16[128,32], index: 4, kind: input, shape index: {}]   ;;  %s2009_s5 = inlined_call_operand.vmem [shape: f32[1,32], index: 5, kind: input, shape index: {}]   ;;  %s2010_s6 = inlined_call_operand.vmem [shape: f32[1,32], index: 6, kind: input, shape index: {}]   ;;  %s2011_s7 = inlined_call_operand.vmem [shape: f32[1,32], index: 7, kind: input, shape index: {}]   ;;  %s2012_s8 = inlined_call_operand.vmem [shape: bf16[32,128], index: 8, kind: input, shape index: {}]   ;;  %s2013_s9 = inlined_call_operand.vmem [shape: f32[1,128], index: 9, kind: input, shape index: {}]   ;;  %s2014_s10 = inlined_call_operand.vmem [shape: bf16[128,32], index: 10, kind: input, shape index: {}]   ;;  %s2015_s11 = inlined_call_operand.vmem [shape: f32[1,32], index: 11, kind: input, shape index: {}]   ;;  %s2016_s12 = inlined_call_operand.hbm [shape: f32[2,8,32], index: 12, kind: output, shape index: {}]  }
   0x1   :  { %2017 = sst [smem:[#allocation6_spill]] %s2004_s0 }
   0x2   :  { %2018 = sst [smem:[#allocation7_spill]] %s2005_s1 }
   0x3   :  { %17 = vsyncpa [#allocation3], 0 }
   0x4   :  { %19 = vsyncpa [#allocation3 + $0x1], 0  ;;  %s1655_s21 = smov 0   ;;  %s1657_s22 = smov 0  }
   0x5   :  { %s1659_s23 = smov 0   ;;  %s1661_s24 = smov 0  }
   0x6 LB: > { %s1676_s25 = sadd.s32 4294967295, %s1584_s24   ;;  %s1318_s26 = sadd.s32 4294967294, %s1584_s24   ;;  %s1584_s24 = sphi %s1661_s24, %s2028_s24   ;;  %s1580_s23 = sphi %s1659_s23, %s2027_s23   ;;  %s1576_s22 = sphi %s1657_s22, %s2026_s22   ;;  %s1572_s21 = sphi %s1655_s21, %s2025_s21  }
   0x7   : > { %s1680_s27 = sadd.s32 1, %s1584_s24   ;;  %s289_s28 = sadd.s32 1, %s1580_s23 }
   0x8   : > { %s286_s29 = ssub.s32 %s1584_s24, %s1680_s27  ;;  %p299_p0 = scmp.ne.s32.totalorder %s1580_s23, %s1576_s22 }
   0x9   : > { %p287_p1 = scmp.eq.s32.totalorder %s286_s29, 0  ;;  %p300_p2 = scmp.eq.s32.totalorder %s1676_s25, 1 }
   0xa   : > { %p305_p3 = scmp.ne.s32.totalorder %s1576_s22, %s1572_s21  ;;  %p306_p4 = scmp.eq.s32.totalorder %s1318_s26, 1 }
   0xb   : > { %s1691_s30 = scalar_select %p287_p1, %s1580_s23, %s289_s28  }
   0xc   : > { %p1693_p5 = por %p300_p2, %p299_p0  ;;  %p1697_p6 = por %p306_p4, %p305_p3 }
   0xd   : > { %2019 = sst [smem:[#allocation5_spill]] %s1691_s30  ;;  %p1321_p7 = scmp.ge.s32.totalorder %s1584_s24, 1 }
   0xe   : > { %p364_p8 = scmp.lt.s32.totalorder %s1584_s24, 3 }
  0x10   : > { %p365_p9 = pnand %p1321_p7, %p364_p8 }
  0x11   : > { %p405_p10 = scmp.lt.s32.totalorder (!%p365_p9), %s1676_s25, 1  ;;  %s2022_s0 = sld [smem:[#allocation6_spill]] (!%p365_p9) }
  0x12   : > { %368 = sbr.rel (%p365_p9) target bundleno = 1913 (0x779), region = 68  ;;  %s2023_s1 = sld [smem:[#allocation7_spill]] (!%p365_p9) }
  0x13   : > { %s402_s17 = sand.u32 (!%p365_p9), 1, %s1576_s22  }
  0x14   : > { %s1322_s18 = sshll.u32 (!%p365_p9), %s402_s17, 3 }
  0x17   : > { %s406_s15 = scalar_select %p405_p10, %s1676_s25, 1  ;;  %vm413_vm0 = vcmask 261120   ;;  %v1586_v2 = vmov 32.0   ;;  %v1338_v14 = vld [vmem:[%s2007_s3 + $0x18] sm:$0xf]  ;;  %vm550_vm5 = vcmask 1047556  }
  0x18   : > { %1506 = vrcp.f32 %v1586_v2  ;;  %v1436_v15 = vld [vmem:[%s2007_s3 + $0x20] sm:$0xf0]  ;;  %v1435_v16 = vld [vmem:[%s2007_s3 + $0x1c] sm:$0xf]  ;;  %v1340_v18 = vld [vmem:[%s2007_s3 + $0x24] sm:$0xf0] }
  0x19   : > { %s1323_s16 = sshll.u32 %s406_s15, 3  ;;  %v1339_v17 = vor.u32 %v1436_v15, %v1338_v14  ;;  %v1326_v19 = vld [vmem:[%s2007_s3] sm:$0xf]  ;;  %v1433_v20 = vld [vmem:[%s2007_s3 + $0x8] sm:$0xf0]  ;;  %v1343_v21 = vor.u32 %v1435_v16, %v1340_v18  ;;  %vm799_vm6 = vcmask 523264  }
  0x1a   : > { %s408_s19 = scalar_lea.vmem %s2022_s0, %s1323_s16  ;;  %v1432_v22 = vld [vmem:[%s2007_s3 + $0x4] sm:$0xf]  ;;  %v1328_v23 = vld [vmem:[%s2007_s3 + $0xc] sm:$0xf0]  ;;  %v1327_v24 = vor.u32 %v1433_v20, %v1326_v19  ;;  %v1346_v26 = vld [vmem:[%s2007_s3 + $0x20] sm:$0xf] }
  0x1b   : > { %v1708_v0 = vld [vmem:[%s408_s19] sm:$0xff]  ;;  %501 = vmatpush.bf16.msra.mxu0 %v1339_v17  ;;  %514 = vmatpush.bf16.msra.mxu2 %v1343_v21  ;;  %v1331_v25 = vor.u32 %v1432_v22, %v1328_v23  ;;  %v1437_v27 = vld [vmem:[%s2007_s3 + $0x28] sm:$0xf0]  ;;  %v1334_v28 = vld [vmem:[%s2007_s3 + $0x8] sm:$0xf]  ;;  %s1587_s16 = smov 64  }
  0x1c   : > { %v414_v1 = vsel %vm413_vm0, %v1708_v0, 0.0  ;;  %v1347_v30 = vor.u32 %v1437_v27, %v1346_v26  ;;  %v1434_v31 = vld [vmem:[%s2007_s3 + $0x10] sm:$0xf0]  ;;  %v1499_v41 = vld [vmem:[%s2023_s1] ss:$0 sm:$0xff]  ;;  %vm866_vm7 = vcmask 1043456  }
  0x1d   : > { %415 = vadd.xlane.f32.xlu0 %v414_v1  ;;  %v1335_v33 = vor.u32 %v1434_v31, %v1334_v28  ;;  %v1500_v44 = vld [vmem:[%s2006_s2] ss:$0 sm:$0xff]  ;;  %v1588_v57 = vmov 1983009808   ;;  %v1589_v59 = vmov 1934713408  }
  0x1e   : > { %v1507_v3 = vpop.eup %1506  ;;  %v546_v58 = vunpack.c.l.s4 %v1588_v57  ;;  %v553_v60 = vunpack.c.l.s4 %v1589_v59  ;;  %vm838_vm8 = vcmask 64512   ;;  %s1429_s19 = sshll.u32 %s1676_s25, 3  ;;  %s404_s15 = scalar_lea.vmem [#allocation2], %s1322_s18 }
  0x1f   : > { %v418_v4 = vmul.f32 32.0, %v1507_v3  ;;  %vm422_vm1 = vweird.f32 %v1507_v3  ;;  %502 = vmatpush.bf16.msra.mxu0 %v1327_v24  ;;  %515 = vmatpush.bf16.msra.mxu2 %v1331_v25  ;;  %s1256_s0 = sshll.u32 %s404_s15, 4  ;;  %s1244_s25 = scalar_lea.sflag [#allocation3], %s402_s17  ;;  %s1257_s0 = int_to_ptr.vmem [resolvable:$true] %s1256_s0 }
  0x20   : > { %v1769_v61 = vunpack.c.0.s8 %v546_v58  ;;  %v1771_v1 = vunpack.c.0.s8 %v553_v60  ;;  %s1542_s18 = scalar_lea.hbm %s2016_s12, 16 }
  0x21   : > { %v419_v5 = vsub.f32 1.0, %v418_v4 }
  0x23   : > { %v420_v6 = vmul.f32 %v1507_v3, %v419_v5  ;;  %527 = vmatpush.bf16.msrb.mxu2 %v1347_v30 }
  0x25   : > { %v421_v7 = vadd.f32 %v1507_v3, %v420_v6 }
  0x27   : > { %v1712_v8 = vsel %vm422_vm1, %v1507_v3, %v421_v7  ;;  %528 = vmatpush.bf16.msrb.mxu2 %v1335_v33 }
  0x90   : > { %v416_v9 = vpop.xlane.xlu0 %415 }
  0x91   : > { %v424_v10 = vmul.f32 %v1712_v8, %v416_v9 }
  0x93   : > { %v425_v11 = vsub.f32 %v1708_v0, %v424_v10 }
  0x95   : > { %v426_v12 = vmul.f32 %v425_v11, %v425_v11 }
  0x97   : > { %v427_v13 = vsel %vm413_vm0, %v426_v12, 0.0 }
  0x98   : > { %428 = vadd.xlane.f32.xlu0 %v427_v13 }
 0x10b   : > { %v429_v29 = vpop.xlane.xlu0 %428 }
 0x10c   : > { %v430_v32 = vmul.f32 %v429_v29, %v1712_v8 }
 0x10e   : > { %v431_v34 = vadd.f32 1e-05, %v430_v32 }
 0x110   : > { %1508 = vrsqrt.f32 %v431_v34  ;;  %vm438_vm3 = vweird.f32 %v431_v34 }
 0x116   : > { %v1509_v35 = vpop.eup %1508 }
 0x117   : > { %v433_v36 = vmul.f32 %v1509_v35, %v431_v34  ;;  %vm439_vm2 = vweird.f32 %v1509_v35 }
 0x118   : > { %vm440_vm4 = vmor %vm438_vm3, %vm439_vm2 }
 0x119   : > { %v434_v37 = vmul.f32 %v1509_v35, %v433_v36 }
 0x11b   : > { %v435_v38 = vmul.f32 0.5, %v434_v37 }
 0x11d   : > { %v436_v39 = vsub.f32 1.5, %v435_v38 }
 0x11f   : > { %v437_v40 = vmul.f32 %v1509_v35, %v436_v39 }
 0x121   : > { %v441_v42 = vsel %vm440_vm4, %v1509_v35, %v437_v40 }
 0x122   : > { %v442_v43 = vmul.f32 %v441_v42, %v425_v11 }
 0x124   : > { %v446_v45 = vmul.f32 %v1499_v41, %v442_v43 }
 0x126   : > { %v450_v46 = vadd.f32 %v1500_v44, %v446_v45 }
 0x128   : > { %v451_v47 = vpack.c.bf16 %v450_v46, %v450_v46 }
 0x12a   : > { %1348 = vmatmul.msk.bf16.vlgmr.msra.gmra.mxu0 %vm413_vm0, %v451_v47  ;;  %1349 = vmatmul.msk.bf16.vlgmr.msra.gmra.mxu2 %vm413_vm0, %v451_v47 }
 0x13a   : > { %1350 = vmatmul.msk.bf16.vlgmr.msrb.gmra.mxu2 %vm413_vm0, %v451_v47 }
 0x1a7   : > { %v504_v48 = vpop.f32.mrf.mxu0 }
 0x1a8   : > { %v534_v53 = vpack.c.bf16 %v504_v48, %v504_v48 }
 0x1aa   : > { %v541_v15 = vshrl.u32 %v534_v53, 16 }
 0x1ad   : > { %v517_v49 = vpop.f32.mrf.mxu2 }
 0x1ae   : > { %v623_v50 = vpack.c.bf16 %v517_v49, %v517_v49 }
 0x1af   : > { %v506_v51 = vpop.f32.mrf.mxu0 }
 0x1b0   : > { %625 = vrot.lane.b32.xlu1 %v623_v50, %s1587_s16  ;;  %v630_v63 = vshrl.u32 %v623_v50, 16 }
 0x1b5   : > { %v519_v52 = vpop.f32.mrf.mxu2 }
 0x1b8   : > { %536 = vrot.lane.b32.xlu1 %v534_v53, %s1587_s16 }
 0x1bd   : > { %v530_v54 = vpop.f32.mrf.mxu2 }
 0x1be   : > { %v1765_v55 = vpack.c.bf16 %v530_v54, %v530_v54 }
 0x1c0   : > { %713 = vrot.lane.b32.xlu0 %v1765_v55, %s1587_s16  ;;  %v718_v27 = vshrl.u32 %v1765_v55, 16 }
 0x1c5   : > { %v532_v56 = vpop.f32.mrf.mxu2 }
 0x222   : > { %v626_v62 = vpop.permute.xlu1 %625 }
 0x223   : > { %v629_v2 = vpack.i.b16 %v626_v62, %v623_v50  ;;  %v631_v3 = vshrl.u32 %v626_v62, 16 }
 0x225   : > { %v632_v4 = vpack.i.b16 %v631_v3, %v630_v63  ;;  %v637_v5 = vperm.slane %v629_v2, %v1769_v61 }
 0x227   : > { %v638_v6 = vrot.slane %v637_v5, 4  ;;  %v643_v7 = vperm.slane %v637_v5, %v1771_v1  ;;  %v656_v9 = vperm.slane %v632_v4, %v1769_v61 }
 0x229   : > { %v639_v10 = vsel %vm550_vm5, 0, %v638_v6  ;;  %v657_v11 = vrot.slane %v656_v9, 4  ;;  %v662_v12 = vperm.slane %v656_v9, %v1771_v1  ;;  %v648_v16 = vrot.slane %v643_v7, 4 }
 0x22a   : > { %v647_v13 = vperm.slane %v639_v10, %v1771_v1  ;;  %v537_v14 = vpop.permute.xlu1 %536 }
 0x22b   : > { %v658_v17 = vsel %vm550_vm5, 0, %v657_v11  ;;  %v540_v18 = vpack.i.b16 %v537_v14, %v534_v53  ;;  %v667_v21 = vrot.slane %v662_v12, 4  ;;  %v542_v22 = vshrl.u32 %v537_v14, 16 }
 0x22c   : > { %v650_v19 = vrot.slane %v647_v13, 4  ;;  %v666_v20 = vperm.slane %v658_v17, %v1771_v1  ;;  %v649_v31 = vsel %vm550_vm5, 0, %v648_v16 }
 0x22d   : > { %v548_v23 = vperm.slane %v540_v18, %v1769_v61  ;;  %v543_v26 = vpack.i.b16 %v542_v22, %v541_v15  ;;  %v668_v32 = vsel %vm550_vm5, 0, %v667_v21 }
 0x22e   : > { %v651_v24 = vsel %vm550_vm5, 0, %v650_v19  ;;  %v669_v25 = vrot.slane %v666_v20, 4  ;;  %v671_v37 = vsel %vm550_vm5, %v650_v19, %v643_v7 }
 0x22f   : > { %v676_v28 = vrot.slane %v651_v24, 4  ;;  %v549_v29 = vrot.slane %v548_v23, 4  ;;  %v555_v30 = vperm.slane %v548_v23, %v1771_v1  ;;  %v568_v34 = vperm.slane %v543_v26, %v1769_v61 }
 0x230   : > { %v670_v33 = vsel %vm550_vm5, 0, %v669_v25  ;;  %v688_v47 = vsel %vm550_vm5, %v669_v25, %v662_v12  ;;  %v675_v50 = vperm.slane %v671_v37, %v1769_v61 }
 0x231   : > { %v693_v35 = vrot.slane %v670_v33, 4  ;;  %v551_v36 = vsel %vm550_vm5, 0, %v549_v29  ;;  %v677_v38 = vsel %vm550_vm5, %v676_v28, %v649_v31  ;;  %v560_v40 = vrot.slane %v555_v30, 4 }
 0x232   : > { %v559_v39 = vperm.slane %v551_v36, %v1771_v1  ;;  %v569_v41 = vrot.slane %v568_v34, 4  ;;  %v714_v42 = vpop.permute.xlu0 %713  ;;  %v681_v43 = vperm.slane %v677_v38, %v1769_v61  ;;  %v574_v44 = vperm.slane %v568_v34, %v1771_v1 }
 0x233   : > { %v717_v45 = vpack.i.b16 %v714_v42, %v1765_v55  ;;  %v719_v46 = vshrl.u32 %v714_v42, 16  ;;  %v694_v56 = vsel %vm550_vm5, %v693_v35, %v668_v32  ;;  %v561_v57 = vsel %vm550_vm5, 0, %v560_v40 }
 0x234   : > { %v562_v48 = vrot.slane %v559_v39, 4  ;;  %v570_v49 = vsel %vm550_vm5, 0, %v569_v41  ;;  %v682_v51 = vrot.slane %v681_v43, 4  ;;  %v692_v59 = vperm.slane %v688_v47, %v1769_v61 }
 0x235   : > { %v578_v52 = vperm.slane %v570_v49, %v1771_v1  ;;  %v720_v53 = vpack.i.b16 %v719_v46, %v718_v27  ;;  %v725_v54 = vperm.slane %v717_v45, %v1769_v61  ;;  %v579_v60 = vrot.slane %v574_v44, 4 }
 0x236   : > { %v563_v55 = vsel %vm550_vm5, 0, %v562_v48  ;;  %v683_v58 = vsel %vm550_vm5, %v682_v51, %v675_v50  ;;  %v583_v3 = vsel %vm550_vm5, %v562_v48, %v555_v30  ;;  %v698_v6 = vperm.slane %v694_v56, %v1769_v61 }
 0x237   : > { %v581_v62 = vrot.slane %v578_v52, 4  ;;  %v588_v63 = vrot.slane %v563_v55, 4  ;;  %v726_v2 = vrot.slane %v725_v54, 4  ;;  %v731_v4 = vperm.slane %v725_v54, %v1771_v1 }
 0x238   : > { %v744_v5 = vperm.slane %v720_v53, %v1769_v61  ;;  %v687_v11 = vperm.slane %v683_v58, %v1771_v1  ;;  %v580_v16 = vsel %vm550_vm5, 0, %v579_v60  ;;  %v699_v18 = vrot.slane %v698_v6, 4 }
 0x239   : > { %v582_v7 = vsel %vm550_vm5, 0, %v581_v62  ;;  %v589_v9 = vsel %vm550_vm5, %v588_v63, %v561_v57  ;;  %v727_v10 = vsel %vm550_vm5, 0, %v726_v2  ;;  %v736_v14 = vrot.slane %v731_v4, 4 }
 0x23a   : > { %v605_v12 = vrot.slane %v582_v7, 4  ;;  %v735_v13 = vperm.slane %v727_v10, %v1771_v1  ;;  %v745_v15 = vrot.slane %v744_v5, 4  ;;  %v750_v17 = vperm.slane %v744_v5, %v1771_v1 }
 0x23b   : > { %v593_v19 = vperm.slane %v589_v9, %v1769_v61  ;;  %v587_v20 = vperm.slane %v583_v3, %v1769_v61  ;;  %v600_v21 = vsel %vm550_vm5, %v581_v62, %v574_v44  ;;  %v700_v25 = vsel %vm550_vm5, %v699_v18, %v692_v59 }
 0x23c   : > { %v738_v22 = vrot.slane %v735_v13, 4  ;;  %v746_v23 = vsel %vm550_vm5, 0, %v745_v15  ;;  %v708_v26 = vshrl.u32 %v687_v11, 16  ;;  %v737_v28 = vsel %vm550_vm5, 0, %v736_v14 }
 0x23d   : > { %v754_v24 = vperm.slane %v746_v23, %v1771_v1  ;;  %v594_v27 = vrot.slane %v593_v19, 4  ;;  %v704_v30 = vperm.slane %v700_v25, %v1771_v1  ;;  %v606_v31 = vsel %vm550_vm5, %v605_v12, %v580_v16 }
 0x23e   : > { %v739_v29 = vsel %vm550_vm5, 0, %v738_v22  ;;  %v755_v32 = vrot.slane %v750_v17, 4  ;;  %v604_v38 = vperm.slane %v600_v21, %v1769_v61  ;;  %v610_v39 = vperm.slane %v606_v31, %v1769_v61 }
 0x23f   : > { %v757_v33 = vrot.slane %v754_v24, 4  ;;  %v764_v34 = vrot.slane %v739_v29, 4  ;;  %v595_v35 = vsel %vm550_vm5, %v594_v27, %v587_v20  ;;  %v707_v36 = vpack.i.b16 %v704_v30, %v687_v11 }
 0x240   : > { %v709_v37 = vshrl.u32 %v704_v30, 16  ;;  %v599_v41 = vperm.slane %v595_v35, %v1771_v1  ;;  %v759_v42 = vsel %vm550_vm5, %v738_v22, %v731_v4  ;;  %v611_v47 = vrot.slane %v610_v39, 4  ;;  %v1444_v39 = vld [vmem:[%s2008_s4 + $0x30] sm:$0xff] }
 0x241   : > { %v758_v40 = vsel %vm550_vm5, 0, %v757_v33  ;;  %v765_v43 = vsel %vm550_vm5, %v764_v34, %v737_v28  ;;  %v804_v45 = vsel %vm799_vm6, %v707_v36, 0  ;;  %v756_v48 = vsel %vm550_vm5, 0, %v755_v32 }
 0x242   : > { %v781_v44 = vrot.slane %v758_v40, 4  ;;  %v710_v46 = vpack.i.b16 %v709_v37, %v708_v26  ;;  %813 = vmatpush.bf16.xpose.msra.mxu3 %v804_v45  ;;  %v769_v49 = vperm.slane %v765_v43, %v1769_v61  ;;  %v776_v50 = vsel %vm550_vm5, %v757_v33, %v750_v17  ;;  %v1443_v43 = vld [vmem:[%s2008_s4 + $0x28] sm:$0xff] }
 0x243   : > { %v612_v52 = vsel %vm550_vm5, %v611_v47, %v604_v38  ;;  %v763_v56 = vperm.slane %v759_v42, %v1769_v61  ;;  %v620_v58 = vshrl.u32 %v599_v41, 16  ;;  %v780_v59 = vperm.slane %v776_v50, %v1769_v61  ;;  %v1445_v38 = vld [vmem:[%s2008_s4 + $0x38] sm:$0xff] }
 0x244   : > { %v823_v51 = vsel %vm799_vm6, %v710_v46, 0  ;;  %v782_v53 = vsel %vm550_vm5, %v781_v44, %v756_v48  ;;  %v616_v54 = vperm.slane %v612_v52, %v1771_v1  ;;  %v770_v57 = vrot.slane %v769_v49, 4 }
 0x245   : > { %832 = vmatpush.bf16.xpose.msrb.mxu0 %v823_v51  ;;  %v786_v55 = vperm.slane %v782_v53, %v1769_v61  ;;  %v1442_v53 = vld [vmem:[%s2008_s4 + $0x20] sm:$0xff] }
 0x246   : > { %v619_v60 = vpack.i.b16 %v616_v54, %v599_v41  ;;  %v621_v62 = vshrl.u32 %v616_v54, 16  ;;  %v771_v63 = vsel %vm550_vm5, %v770_v57, %v763_v56 }
 0x247   : > { %v787_v2 = vrot.slane %v786_v55, 4  ;;  %v775_v3 = vperm.slane %v771_v63, %v1771_v1 }
 0x248   : > { %v622_v4 = vpack.i.b16 %v621_v62, %v620_v58 }
 0x249   : > { %v788_v5 = vsel %vm550_vm5, %v787_v2, %v780_v59  ;;  %1351 = vmatmul.msk.bf16.vlgmr.msra.gmra.mxu3 %vm799_vm6, %v619_v60  ;;  %v796_v9 = vshrl.u32 %v775_v3, 16  ;;  %v1441_v2 = vld [vmem:[%s2008_s4 + $0x18] sm:$0xff] }
 0x24a   : > { %v792_v6 = vperm.slane %v788_v5, %v1771_v1  ;;  %1067 = vmatpush.bf16.msrb.mxu3 %v1445_v38 }
 0x24c   : > { %1352 = vmatmul.msk.bf16.vlgmr.msrb.gmra.mxu0 %vm799_vm6, %v622_v4  ;;  %v795_v7 = vpack.i.b16 %v792_v6, %v775_v3  ;;  %v797_v10 = vshrl.u32 %v792_v6, 16 }
 0x24e   : > { %v798_v11 = vpack.i.b16 %v797_v10, %v796_v9  ;;  %v868_v12 = vsel %vm866_vm7, %v795_v7, 0  ;;  %1068 = vmatpush.bf16.msrb.mxu3 %v1444_v39 }
 0x24f   : > { %877 = vmatpush.bf16.msra.mxu1 %v868_v12 }
 0x250   : > { %v887_v13 = vsel %vm866_vm7, %v798_v11, 0 }
 0x251   : > { %896 = vmatpush.bf16.msra.mxu2 %v887_v13  ;;  %v1440_v13 = vld [vmem:[%s2008_s4 + $0x10] sm:$0xff] }
 0x252   : > { %1069 = vmatpush.bf16.msrb.mxu3 %v1443_v43 }
 0x256   : > { %1070 = vmatpush.bf16.msrb.mxu3 %v1442_v53 }
 0x25a   : > { %1071 = vmatpush.bf16.msrb.mxu3 %v1441_v2 }
 0x25e   : > { %1072 = vmatpush.bf16.msrb.mxu3 %v1440_v13  ;;  %v1448_v13 = vld [vmem:[%s2014_s10] sm:$0xff] }
 0x2c9   : > { %v834_v14 = vpop.f32.mrf.mxu0 }
 0x2ca   : > { %v842_v15 = vsel %vm838_vm8, %v834_v14, -inf }
 0x2cb   : > { %843 = vmax.xlane.f32.xlu2 %v842_v15 }
 0x2cc   : > { %v815_v16 = vpop.f32.mrf.mxu3 }
 0x2cd   : > { %v839_v18 = vsel %vm838_vm8, %v815_v16, -inf }
 0x2d1   : > { %v836_v17 = vpop.f32.mrf.mxu0 }
 0x2d3   : > { %840 = vmax.xlane.f32.xlu2 %v839_v18 }
 0x2d4   : > { %v817_v19 = vpop.f32.mrf.mxu3 }
 0x33e   : > { %v844_v20 = vpop.xlane.xlu2 %843 }
 0x33f   : > { %v846_v21 = vsub.f32 %v834_v14, %v844_v20 }
 0x341   : > { %v849_v22 = vmul.f32 1.442695, %v846_v21  ;;  %v1439_v21 = vld [vmem:[%s2008_s4 + $0x8] sm:$0xff] }
 0x342   : > { %1073 = vmatpush.bf16.msrb.mxu3 %v1439_v21 }
 0x343   : > { %1510 = vpow2.f32 %v849_v22 }
 0x346   : > { %v841_v23 = vpop.xlane.xlu2 %840 }
 0x347   : > { %v845_v24 = vsub.f32 %v815_v16, %v841_v23 }
 0x349   : > { %v1511_v25 = vpop.eup %1510  ;;  %v847_v26 = vmul.f32 1.442695, %v845_v24 }
 0x34a   : > { %v854_v27 = vsel %vm838_vm8, %v1511_v25, 0.0 }
 0x34b   : > { %1512 = vpow2.f32 %v847_v26  ;;  %855 = vadd.xlane.f32.xlu1 %v854_v27 }
 0x351   : > { %v1513_v28 = vpop.eup %1512 }
 0x352   : > { %v851_v29 = vsel %vm838_vm8, %v1513_v28, 0.0 }
 0x353   : > { %852 = vadd.xlane.f32.xlu2 %v851_v29 }
 0x3be   : > { %v856_v30 = vpop.xlane.xlu1 %855 }
 0x3bf   : > { %1514 = vrcp.f32 %v856_v30 }
 0x3c5   : > { %v1515_v31 = vpop.eup %1514 }
 0x3c6   : > { %v860_v32 = vmul.f32 %v1515_v31, %v1511_v25  ;;  %v853_v33 = vpop.xlane.xlu2 %852 }
 0x3c7   : > { %1516 = vrcp.f32 %v853_v33 }
 0x3c8   : > { %v862_v34 = vpack.c.bf16 %v860_v32, %v860_v32 }
 0x3ca   : > { %1354 = vmatmul.msk.bf16.vlgmr.msra.gmra.mxu2 %vm838_vm8, %v862_v34 }
 0x3cd   : > { %v1517_v35 = vpop.eup %1516 }
 0x3ce   : > { %v859_v36 = vmul.f32 %v1517_v35, %v1513_v28 }
 0x3d0   : > { %v861_v37 = vpack.c.bf16 %v859_v36, %v859_v36 }
 0x3d2   : > { %1353 = vmatmul.msk.bf16.vlgmr.msra.gmra.mxu1 %vm838_vm8, %v861_v37 }
 0x44d   : > { %v898_v40 = vpop.f32.mrf.mxu2 }
 0x44e   : > { %v913_v41 = vrot.slane %v898_v40, 4  ;;  %v918_v42 = vperm.slane %v898_v40, %v1769_v61 }
 0x44f   : > { %v879_v44 = vpop.f32.mrf.mxu1 }
 0x450   : > { %v914_v45 = vsel %vm550_vm5, 0.0, %v913_v41  ;;  %v923_v46 = vrot.slane %v918_v42, 4  ;;  %v902_v47 = vrot.slane %v879_v44, 4  ;;  %v908_v48 = vperm.slane %v879_v44, %v1769_v61 }
 0x451   : > { %v922_v49 = vperm.slane %v914_v45, %v1769_v61 }
 0x452   : > { %v904_v50 = vsel %vm550_vm5, 0.0, %v902_v47  ;;  %v924_v51 = vsel %vm550_vm5, %v923_v46, %v908_v48  ;;  %v925_v52 = vrot.slane %v908_v48, 4 }
 0x453   : > { %v935_v54 = vrot.slane %v922_v49, 4  ;;  %v912_v56 = vperm.slane %v904_v50, %v1769_v61  ;;  %v930_v57 = vperm.slane %v924_v51, %v1771_v1  ;;  %v1447_v50 = vld [vmem:[%s2012_s8 + $0x8] sm:$0xff]  ;;  %v1455_v51 = vld [vmem:[%s2014_s10 + $0x38] sm:$0xff] }
 0x454   : > { %v926_v55 = vsel %vm550_vm5, %v918_v42, %v925_v52  ;;  %1143 = vmatpush.bf16.msra.mxu0 %v1447_v50  ;;  %1228 = vmatpush.bf16.msrb.mxu1 %v1455_v51 }
 0x455   : > { %v934_v58 = vperm.slane %v926_v55, %v1771_v1  ;;  %v936_v59 = vsel %vm550_vm5, %v935_v54, %v912_v56  ;;  %v937_v60 = vrot.slane %v912_v56, 4  ;;  %v900_v62 = vpop.f32.mrf.mxu2  ;;  %v947_v4 = vrot.slane %v930_v57, 4  ;;  %v1454_v54 = vld [vmem:[%s2014_s10 + $0x30] sm:$0xff] }
 0x456   : > { %v942_v63 = vperm.slane %v936_v59, %v1771_v1 }
 0x457   : > { %v938_v3 = vsel %vm550_vm5, %v922_v49, %v937_v60  ;;  %v949_v5 = vrot.slane %v934_v58, 4  ;;  %v881_v6 = vpop.f32.mrf.mxu1  ;;  %v948_v14 = vsel %vm550_vm5, 0.0, %v947_v4 }
 0x458   : > { %v946_v7 = vperm.slane %v938_v3, %v1771_v1  ;;  %v951_v10 = vrot.slane %v942_v63, 4  ;;  %1229 = vmatpush.bf16.msrb.mxu1 %v1454_v54  ;;  %v1503_v3 = vld [vmem:[%s2011_s7] ss:$0 sm:$0xff] }
 0x459   : > { %v950_v9 = vsel %vm550_vm5, 0.0, %v949_v5  ;;  %v955_v16 = vsel %vm550_vm5, %v949_v5, %v930_v57 }
 0x45a   : > { %v953_v11 = vrot.slane %v946_v7, 4  ;;  %v960_v12 = vrot.slane %v950_v9, 4  ;;  %v952_v20 = vsel %vm550_vm5, 0.0, %v951_v10  ;;  %v959_v22 = vperm.slane %v955_v16, %v1769_v61  ;;  %v1453_v7 = vld [vmem:[%s2014_s10 + $0x28] sm:$0xff]  ;;  %v1452_v9 = vld [vmem:[%s2014_s10 + $0x20] sm:$0xff]  ;;  %v1451_v10 = vld [vmem:[%s2014_s10 + $0x18] sm:$0xff] }
 0x45c   : > { %v954_v15 = vsel %vm550_vm5, 0.0, %v953_v11  ;;  %v961_v17 = vsel %vm550_vm5, %v960_v12, %v948_v14  ;;  %v966_v23 = vsel %vm550_vm5, %v953_v11, %v942_v63  ;;  %1230 = vmatpush.bf16.msrb.mxu1 %v1453_v7  ;;  %v1450_v11 = vld [vmem:[%s2014_s10 + $0x10] sm:$0xff]  ;;  %v1449_v12 = vld [vmem:[%s2014_s10 + $0x8] sm:$0xff]  ;;  %v1504_v14 = vld [vmem:[%s2013_s9] ss:$0 sm:$0xff] }
 0x45d   : > { %v971_v18 = vrot.slane %v954_v15, 4  ;;  %v965_v19 = vperm.slane %v961_v17, %v1769_v61  ;;  %v970_v28 = vperm.slane %v966_v23, %v1769_v61 }
 0x45f   : > { %v972_v24 = vsel %vm550_vm5, %v971_v18, %v952_v20  ;;  %v977_v25 = vrot.slane %v965_v19, 4 }
 0x460   : > { %v976_v26 = vperm.slane %v972_v24, %v1769_v61  ;;  %v1438_v61 = vld [vmem:[%s2008_s4] sm:$0xff]  ;;  %1231 = vmatpush.bf16.msrb.mxu1 %v1452_v9 }
 0x461   : > { %v978_v27 = vsel %vm550_vm5, %v977_v25, %v959_v22  ;;  %1074 = vmatpush.bf16.msrb.mxu3 %v1438_v61 }
 0x462   : > { %v982_v29 = vperm.slane %v978_v27, %v1771_v1  ;;  %v983_v30 = vrot.slane %v976_v26, 4 }
 0x464   : > { %v984_v31 = vsel %vm550_vm5, %v983_v30, %v970_v28  ;;  %v991_v32 = vrot.slane %v982_v29, 4  ;;  %1232 = vmatpush.bf16.msrb.mxu1 %v1451_v10  ;;  %v1505_v28 = vld [vmem:[%s2015_s11] ss:$0 sm:$0xff] }
 0x465   : > { %v988_v33 = vperm.slane %v984_v31, %v1771_v1  ;;  %v1501_v1 = vld [vmem:[%s2009_s5] ss:$0 sm:$0xff] }
 0x467   : > { %v992_v34 = vsel %vm550_vm5, %v988_v33, %v991_v32  ;;  %v989_v35 = vrot.slane %v988_v33, 4 }
 0x468   : > { %994 = vrot.lane.b32.xlu2 %v992_v34, %s1587_s16  ;;  %1233 = vmatpush.bf16.msrb.mxu1 %v1450_v11  ;;  %s1254_s16 = scalar_lea.hbm %s2016_s12, %s1429_s19 }
 0x469   : > { %v990_v36 = vsel %vm550_vm5, %v989_v35, %v982_v29  ;;  %s1258_s30 = sshll.u32 %s1254_s16, 4  ;;  %s1259_s30 = int_to_ptr.hbm [resolvable:$true] %s1258_s30 }
 0x46a   : > { %s1536_s1 = sshra.s32 %s1259_s30, 4  ;;  %s1537_s1 = int_to_ptr.hbm [resolvable:$true] %s1536_s1 }
 0x46b   : > { %s1538_s20 = scalar_lea.hbm %s1537_s1, 8  ;;  %p1543_p0 = scmp.lt.s32.totalorder %s1537_s1, %s2016_s12 }
 0x46c   : > { %1234 = vmatpush.bf16.msrb.mxu1 %v1449_v12  ;;  %p1539_p11 = scmp.ne.s32.totalorder %s1537_s1, %s1538_s20  ;;  %p1544_p1 = scmp.lt.s32.totalorder %s1542_s18, %s1538_s20 }
 0x46e   : > { %p1540_p12 = pnand %p1539_p11, %p1693_p5  ;;  %p1545_p2 = por %p1544_p1, %p1543_p0 }
 0x470   : > { %1235 = vmatpush.bf16.msrb.mxu1 %v1448_v13  ;;  %p1541_p13 = pneg %p1540_p12 }
 0x472   : > { %p1546_p3 = pnand %p1545_p2, %p1541_p13 }
 0x4c2   : > { %v995_v37 = vpop.permute.xlu2 %994 }
 0x4c3   : > { %v997_v38 = vsel %vm799_vm6, %v990_v36, %v995_v37 }
 0x4c4   : > { %v998_v39 = vpack.c.bf16 %v997_v38, %v997_v38 }
 0x4c6   : > { %1075 = vmatmul.bf16.vlgmr.msrb.gmra.mxu3 %v998_v39 }
 0x549   : > { %v1076_v40 = vpop.f32.mrf.mxu3 }
 0x54a   : > { %v1077_v41 = vadd.f32 %v1501_v1, %v1076_v40 }
 0x54c   : > { %v1919_v42 = vadd.f32 %v1077_v41, %v1708_v0  ;;  %v1446_v0 = vld [vmem:[%s2012_s8] sm:$0xff] }
 0x54d   : > { %1144 = vmatpush.bf16.msra.mxu0 %v1446_v0 }
 0x54e   : > { %v1083_v43 = vsel %vm413_vm0, %v1919_v42, 0.0 }
 0x54f   : > { %1084 = vadd.xlane.f32.xlu0 %v1083_v43 }
 0x551   : > { %v1078_v44 = vpop.f32.mrf.mxu3 }
 0x5c2   : > { %v1085_v45 = vpop.xlane.xlu0 %1084 }
 0x5c3   : > { %v1086_v46 = vmul.f32 %v1085_v45, %v1712_v8 }
 0x5c5   : > { %v1087_v47 = vsub.f32 %v1919_v42, %v1086_v46 }
 0x5c7   : > { %v1088_v48 = vmul.f32 %v1087_v47, %v1087_v47 }
 0x5c9   : > { %v1089_v49 = vsel %vm413_vm0, %v1088_v48, 0.0 }
 0x5ca   : > { %1090 = vadd.xlane.f32.xlu2 %v1089_v49 }
 0x63d   : > { %v1091_v52 = vpop.xlane.xlu2 %1090 }
 0x63e   : > { %v1092_v53 = vmul.f32 %v1091_v52, %v1712_v8  ;;  %v1502_v8 = vld [vmem:[%s2010_s6] ss:$0 sm:$0xff] }
 0x640   : > { %v1093_v56 = vadd.f32 1e-05, %v1092_v53 }
 0x642   : > { %1518 = vrsqrt.f32 %v1093_v56  ;;  %vm1100_vm10 = vweird.f32 %v1093_v56 }
 0x648   : > { %v1519_v57 = vpop.eup %1518 }
 0x649   : > { %v1095_v55 = vmul.f32 %v1519_v57, %v1093_v56  ;;  %vm1101_vm9 = vweird.f32 %v1519_v57 }
 0x64a   : > { %vm1102_vm11 = vmor %vm1100_vm10, %vm1101_vm9 }
 0x64b   : > { %v1096_v58 = vmul.f32 %v1519_v57, %v1095_v55 }
 0x64d   : > { %v1097_v59 = vmul.f32 0.5, %v1096_v58 }
 0x64f   : > { %v1098_v60 = vsub.f32 1.5, %v1097_v59 }
 0x651   : > { %v1099_v62 = vmul.f32 %v1519_v57, %v1098_v60 }
 0x653   : > { %v1103_v63 = vsel %vm1102_vm11, %v1519_v57, %v1099_v62 }
 0x654   : > { %v1104_v2 = vmul.f32 %v1103_v63, %v1087_v47 }
 0x656   : > { %v1108_v4 = vmul.f32 %v1502_v8, %v1104_v2 }
 0x658   : > { %v1112_v5 = vadd.f32 %v1503_v3, %v1108_v4 }
 0x65a   : > { %v1113_v6 = vpack.c.bf16 %v1112_v5, %v1112_v5 }
 0x65c   : > { %1395 = vmatmul.msk.bf16.vlgmr.msra.gmra.mxu0 %vm413_vm0, %v1113_v6 }
 0x6d9   : > { %v1146_v15 = vpop.f32.mrf.mxu0 }
 0x6da   : > { %v1147_v16 = vadd.f32 %v1504_v14, %v1146_v15 }
 0x6dc   : > { %v1151_v17 = vmul.f32 0.044715, %v1147_v16  ;;  %v1150_v24 = vmul.f32 0.5, %v1147_v16 }
 0x6de   : > { %v1152_v18 = vmul.f32 %v1151_v17, %v1147_v16 }
 0x6e0   : > { %v1153_v19 = vmul.f32 %v1152_v18, %v1147_v16 }
 0x6e1   : > { %v1148_v20 = vpop.f32.mrf.mxu0 }
 0x6e2   : > { %v1154_v21 = vadd.f32 %v1153_v19, %v1147_v16 }
 0x6e4   : > { %v1155_v22 = vmul.f32 0.7978846, %v1154_v21 }
 0x6e6   : > { %1520 = vtanh.f32 %v1155_v22 }
 0x6ec   : > { %v1521_v23 = vpop.eup %1520 }
 0x6ed   : > { %v1157_v25 = vadd.f32 1.0, %v1521_v23 }
 0x6ef   : > { %v1158_v26 = vmul.f32 %v1157_v25, %v1150_v24 }
 0x6f1   : > { %v1159_v27 = vpack.c.bf16 %v1158_v26, %v1158_v26 }
 0x6f3   : > { %1236 = vmatmul.bf16.vlgmr.msrb.gmra.mxu1 %v1159_v27 }
 0x770   : > { %v1237_v29 = vpop.f32.mrf.mxu1 }
 0x771   : > { %v1238_v30 = vadd.f32 %v1505_v28, %v1237_v29 }
 0x773   : > { %v1241_v31 = vadd.f32 %v1238_v30, %v1919_v42 }
 0x775   : > { %1242 = vst.msk [vmem:[%s404_s15] sm:$0xff] %vm413_vm0, %v1241_v31 }
 0x776   : > { %1549 = shalt.err (!%p1546_p3)
}
 0x777   : > { %1456 = dma.vmem_to_hbm [thread:$0]  (%p1693_p5), %s1257_s0, 128, %s1259_s30, %s1244_s25  }
 0x778   : > { %v1239_v32 = vpop.f32.mrf.mxu1 }
 0x779 PF: > { %p1462_p4 = scmp.ge.s32.totalorder %s1584_s24, 2  ;;  %s1270_s17 = sand.u32 1, %s1572_s21  }
 0x77a   : > { %s1271_s16 = scalar_lea.sflag [#allocation3], %s1270_s17 }
 0x77b   : > { %p1459_p7 = pnand %p1462_p4, %p1697_p6 }
 0x77d   : > { %p1460_p8 = pneg %p1459_p7 }
 0x77f   : > { %1567 = dma.done.wait (%p1460_p8), %s1271_s16, 128  }
 0x780   : > { %1569 = vsyncadd (%p1460_p8), %s1271_s16, 4294967168  ;;  %s2024_s1 = sld [smem:[#allocation5_spill]]  ;;  %p22_p9 = scmp.ge.s32.totalorder %s1680_s27, 4  }
 0x781   : > { %s2025_s21 = smov %s1576_s22  ;;  %s2026_s22 = smov %s1580_s23 }
 0x782   : > { %s2028_s24 = smov %s1680_s27  ;;  %24 = sbr.rel (!%p22_p9) target bundleno = 6 (0x6), region = 103 }
 0x786   : > { %s2027_s23 = smov %s2024_s1 }
 0x787   :  { %1277 = vsyncpa [#allocation3], 1 }
 0x788   :  { %1279 = vsyncpa [#allocation3 + $0x1], 1 }

// kernel: tpu_custom_call.1
= control target key start
LH: loop header
LB: loop body
LE: loop exit
PB: predicated region body
PF: predicated region fallthrough
CT: control target
= control target key end

     0   :  { %s1543_s0 = inlined_call_operand.vmem [shape: f32[2,8,32], index: 0, kind: input, shape index: {}]   ;;  %s1544_s1 = inlined_call_operand.vmem [shape: f32[1,32], index: 1, kind: input, shape index: {}]   ;;  %s1545_s2 = inlined_call_operand.vmem [shape: f32[1,32], index: 2, kind: input, shape index: {}]   ;;  %s1546_s3 = inlined_call_operand.vmem [shape: bf16[32,384], index: 3, kind: input, shape index: {}]   ;;  %s1547_s4 = inlined_call_operand.vmem [shape: bf16[128,32], index: 4, kind: input, shape index: {}]   ;;  %s1548_s5 = inlined_call_operand.vmem [shape: f32[1,32], index: 5, kind: input, shape index: {}]   ;;  %s1549_s6 = inlined_call_operand.vmem [shape: f32[1,32], index: 6, kind: input, shape index: {}]   ;;  %s1550_s7 = inlined_call_operand.vmem [shape: f32[1,32], index: 7, kind: input, shape index: {}]   ;;  %s1551_s8 = inlined_call_operand.vmem [shape: bf16[32,128], index: 8, kind: input, shape index: {}]   ;;  %s1552_s9 = inlined_call_operand.vmem [shape: f32[1,128], index: 9, kind: input, shape index: {}]   ;;  %s1553_s10 = inlined_call_operand.vmem [shape: bf16[128,32], index: 10, kind: input, shape index: {}]   ;;  %s1554_s11 = inlined_call_operand.vmem [shape: f32[1,32], index: 11, kind: input, shape index: {}]   ;;  %s1555_s12 = inlined_call_operand.hbm [shape: f32[2,8,32], index: 12, kind: output, shape index: {}]  }
   0x1   :  { %1556 = sst [smem:[#allocation6_spill]] %s1543_s0 }
   0x2   :  { %1557 = sst [smem:[#allocation7_spill]] %s1544_s1 }
   0x3   :  { %17 = vsyncpa [#allocation3], 0 }
   0x4   :  { %19 = vsyncpa [#allocation3 + $0x1], 0  ;;  %s1307_s21 = smov 0   ;;  %s1309_s22 = smov 0  }
   0x5   :  { %s1311_s23 = smov 0   ;;  %s1313_s24 = smov 0  }
   0x6 LB: > { %s1328_s25 = sadd.s32 4294967295, %s1238_s24   ;;  %s974_s26 = sadd.s32 4294967294, %s1238_s24   ;;  %s1238_s24 = sphi %s1313_s24, %s1567_s24   ;;  %s1234_s23 = sphi %s1311_s23, %s1566_s23   ;;  %s1230_s22 = sphi %s1309_s22, %s1565_s22   ;;  %s1226_s21 = sphi %s1307_s21, %s1564_s21  }
   0x7   : > { %s1332_s27 = sadd.s32 1, %s1238_s24   ;;  %s289_s28 = sadd.s32 1, %s1234_s23 }
   0x8   : > { %s286_s29 = ssub.s32 %s1238_s24, %s1332_s27  ;;  %p299_p0 = scmp.ne.s32.totalorder %s1234_s23, %s1230_s22 }
   0x9   : > { %p287_p1 = scmp.eq.s32.totalorder %s286_s29, 0  ;;  %p300_p2 = scmp.eq.s32.totalorder %s1328_s25, 1 }
   0xa   : > { %p305_p3 = scmp.ne.s32.totalorder %s1230_s22, %s1226_s21  ;;  %p306_p4 = scmp.eq.s32.totalorder %s974_s26, 1 }
   0xb   : > { %s1343_s30 = scalar_select %p287_p1, %s1234_s23, %s289_s28  }
   0xc   : > { %p1345_p5 = por %p300_p2, %p299_p0  ;;  %p1349_p6 = por %p306_p4, %p305_p3 }
   0xd   : > { %1558 = sst [smem:[#allocation5_spill]] %s1343_s30  ;;  %p977_p7 = scmp.ge.s32.totalorder %s1238_s24, 1 }
   0xe   : > { %p364_p8 = scmp.lt.s32.totalorder %s1238_s24, 3 }
  0x10   : > { %p365_p9 = pnand %p977_p7, %p364_p8 }
  0x11   : > { %p405_p10 = scmp.lt.s32.totalorder (!%p365_p9), %s1328_s25, 1  ;;  %s1561_s0 = sld [smem:[#allocation6_spill]] (!%p365_p9) }
  0x12   : > { %368 = sbr.rel (%p365_p9) target bundleno = 1878 (0x756), region = 68  ;;  %s1562_s1 = sld [smem:[#allocation7_spill]] (!%p365_p9) }
  0x13   : > { %s402_s17 = sand.u32 (!%p365_p9), 1, %s1230_s22  }
  0x14   : > { %s978_s18 = sshll.u32 (!%p365_p9), %s402_s17, 3 }
  0x17   : > { %s406_s15 = scalar_select %p405_p10, %s1328_s25, 1  ;;  %vm413_vm0 = vcmask 261120   ;;  %v1240_v2 = vmov 32.0   ;;  %v994_v14 = vld [vmem:[%s1546_s3 + $0x18] sm:$0xf]  ;;  %vm546_vm5 = vcmask 523264  }
  0x18   : > { %1160 = vrcp.f32 %v1240_v2  ;;  %v1092_v15 = vld [vmem:[%s1546_s3 + $0x20] sm:$0xf0]  ;;  %v1091_v16 = vld [vmem:[%s1546_s3 + $0x1c] sm:$0xf]  ;;  %v996_v18 = vld [vmem:[%s1546_s3 + $0x24] sm:$0xf0] }
  0x19   : > { %s979_s16 = sshll.u32 %s406_s15, 3  ;;  %v995_v17 = vor.u32 %v1092_v15, %v994_v14  ;;  %v982_v19 = vld [vmem:[%s1546_s3] sm:$0xf]  ;;  %v1089_v20 = vld [vmem:[%s1546_s3 + $0x8] sm:$0xf0]  ;;  %v999_v21 = vor.u32 %v1091_v16, %v996_v18  ;;  %vm613_vm6 = vcmask 1043456  }
  0x1a   : > { %s408_s19 = scalar_lea.vmem %s1561_s0, %s979_s16  ;;  %v1088_v22 = vld [vmem:[%s1546_s3 + $0x4] sm:$0xf]  ;;  %v984_v23 = vld [vmem:[%s1546_s3 + $0xc] sm:$0xf0]  ;;  %v983_v24 = vor.u32 %v1089_v20, %v982_v19  ;;  %v1002_v26 = vld [vmem:[%s1546_s3 + $0x20] sm:$0xf] }
  0x1b   : > { %v1360_v0 = vld [vmem:[%s408_s19] sm:$0xff]  ;;  %501 = vmatpush.bf16.msra.mxu0 %v995_v17  ;;  %514 = vmatpush.bf16.msra.mxu2 %v999_v21  ;;  %v987_v25 = vor.u32 %v1088_v22, %v984_v23  ;;  %v1093_v27 = vld [vmem:[%s1546_s3 + $0x28] sm:$0xf0]  ;;  %v990_v28 = vld [vmem:[%s1546_s3 + $0x8] sm:$0xf]  ;;  %s1241_s16 = smov 64  }
  0x1c   : > { %v414_v1 = vsel %vm413_vm0, %v1360_v0, 0.0  ;;  %v1003_v30 = vor.u32 %v1093_v27, %v1002_v26  ;;  %v1090_v31 = vld [vmem:[%s1546_s3 + $0x10] sm:$0xf0]  ;;  %v1153_v41 = vld [vmem:[%s1562_s1] ss:$0 sm:$0xff]  ;;  %vm585_vm7 = vcmask 64512  }
  0x1d   : > { %415 = vadd.xlane.f32.xlu0 %v414_v1  ;;  %v991_v33 = vor.u32 %v1090_v31, %v990_v28  ;;  %v1154_v44 = vld [vmem:[%s1545_s2] ss:$0 sm:$0xff]  ;;  %v1101_v26 = vld [vmem:[%s1547_s4 + $0x38] sm:$0xff]  ;;  %v1100_v27 = vld [vmem:[%s1547_s4 + $0x30] sm:$0xff]  ;;  %s1085_s19 = sshll.u32 %s1328_s25, 3  ;;  %s404_s15 = scalar_lea.vmem [#allocation2], %s978_s18 }
  0x1e   : > { %v1161_v3 = vpop.eup %1160  ;;  %v1099_v28 = vld [vmem:[%s1547_s4 + $0x28] sm:$0xff]  ;;  %v1096_v31 = vld [vmem:[%s1547_s4 + $0x10] sm:$0xff]  ;;  %s912_s0 = sshll.u32 %s404_s15, 4  ;;  %s900_s25 = scalar_lea.sflag [#allocation3], %s402_s17  ;;  %s913_s0 = int_to_ptr.vmem [resolvable:$true] %s912_s0 }
  0x1f   : > { %v418_v4 = vmul.f32 32.0, %v1161_v3  ;;  %vm422_vm1 = vweird.f32 %v1161_v3  ;;  %502 = vmatpush.bf16.msra.mxu0 %v983_v24  ;;  %515 = vmatpush.bf16.msra.mxu2 %v987_v25  ;;  %s1196_s18 = scalar_lea.hbm %s1555_s12, 16 }
  0x21   : > { %v419_v5 = vsub.f32 1.0, %v418_v4 }
  0x23   : > { %v420_v6 = vmul.f32 %v1161_v3, %v419_v5  ;;  %527 = vmatpush.bf16.msrb.mxu2 %v1003_v30  ;;  %v1097_v30 = vld [vmem:[%s1547_s4 + $0x18] sm:$0xff] }
  0x25   : > { %v421_v7 = vadd.f32 %v1161_v3, %v420_v6 }
  0x27   : > { %v1364_v8 = vsel %vm422_vm1, %v1161_v3, %v421_v7  ;;  %528 = vmatpush.bf16.msrb.mxu2 %v991_v33  ;;  %v1095_v33 = vld [vmem:[%s1547_s4 + $0x8] sm:$0xff] }
  0x90   : > { %v416_v9 = vpop.xlane.xlu0 %415 }
  0x91   : > { %v424_v10 = vmul.f32 %v1364_v8, %v416_v9 }
  0x93   : > { %v425_v11 = vsub.f32 %v1360_v0, %v424_v10 }
  0x95   : > { %v426_v12 = vmul.f32 %v425_v11, %v425_v11 }
  0x97   : > { %v427_v13 = vsel %vm413_vm0, %v426_v12, 0.0 }
  0x98   : > { %428 = vadd.xlane.f32.xlu0 %v427_v13 }
 0x10b   : > { %v429_v29 = vpop.xlane.xlu0 %428 }
 0x10c   : > { %v430_v32 = vmul.f32 %v429_v29, %v1364_v8  ;;  %v1098_v29 = vld [vmem:[%s1547_s4 + $0x20] sm:$0xff] }
 0x10e   : > { %v431_v34 = vadd.f32 1e-05, %v430_v32 }
 0x110   : > { %1162 = vrsqrt.f32 %v431_v34  ;;  %vm438_vm3 = vweird.f32 %v431_v34 }
 0x116   : > { %v1163_v35 = vpop.eup %1162 }
 0x117   : > { %v433_v36 = vmul.f32 %v1163_v35, %v431_v34  ;;  %vm439_vm2 = vweird.f32 %v1163_v35 }
 0x118   : > { %vm440_vm4 = vmor %vm438_vm3, %vm439_vm2 }
 0x119   : > { %v434_v37 = vmul.f32 %v1163_v35, %v433_v36 }
 0x11b   : > { %v435_v38 = vmul.f32 0.5, %v434_v37  ;;  %v1094_v37 = vld [vmem:[%s1547_s4] sm:$0xff] }
 0x11d   : > { %v436_v39 = vsub.f32 1.5, %v435_v38 }
 0x11f   : > { %v437_v40 = vmul.f32 %v1163_v35, %v436_v39 }
 0x121   : > { %v441_v42 = vsel %vm440_vm4, %v1163_v35, %v437_v40 }
 0x122   : > { %v442_v43 = vmul.f32 %v441_v42, %v425_v11 }
 0x124   : > { %v446_v45 = vmul.f32 %v1153_v41, %v442_v43  ;;  %v1155_v41 = vld [vmem:[%s1548_s5] ss:$0 sm:$0xff] }
 0x126   : > { %v450_v46 = vadd.f32 %v1154_v44, %v446_v45 }
 0x128   : > { %v451_v47 = vpack.c.bf16 %v450_v46, %v450_v46 }
 0x12a   : > { %1004 = vmatmul.msk.bf16.vlgmr.msra.gmra.mxu0 %vm413_vm0, %v451_v47  ;;  %1005 = vmatmul.msk.bf16.vlgmr.msra.gmra.mxu2 %vm413_vm0, %v451_v47 }
 0x13a   : > { %1006 = vmatmul.msk.bf16.vlgmr.msrb.gmra.mxu2 %vm413_vm0, %v451_v47 }
 0x1a7   : > { %v504_v48 = vpop.f32.mrf.mxu0 }
 0x1a8   : > { %v534_v54 = vpack.c.bf16 %v504_v48, %v504_v48 }
 0x1ad   : > { %v517_v49 = vpop.f32.mrf.mxu2 }
 0x1ae   : > { %v538_v50 = vpack.c.bf16 %v517_v49, %v517_v49 }
 0x1af   : > { %v506_v51 = vpop.f32.mrf.mxu0 }
 0x1b0   : > { %540 = vrot.lane.b32.xlu1 %v538_v50, %s1241_s16  ;;  %v551_v52 = vsel %vm546_vm5, %v538_v50, 0 }
 0x1b1   : > { %560 = vmatpush.bf16.xpose.msra.mxu3 %v551_v52  ;;  %v1103_v52 = vld [vmem:[%s1551_s8 + $0x8] sm:$0xff] }
 0x1b5   : > { %v519_v53 = vpop.f32.mrf.mxu2 }
 0x1b6   : > { %v1111_v53 = vld [vmem:[%s1553_s10 + $0x38] sm:$0xff] }
 0x1b8   : > { %536 = vrot.lane.b32.xlu1 %v534_v54, %s1241_s16  ;;  %1007 = vmatmul.msk.bf16.vlgmr.msra.gmra.mxu3 %vm546_vm5, %v534_v54 }
 0x1b9   : > { %723 = vmatpush.bf16.msrb.mxu3 %v1101_v26 }
 0x1bd   : > { %v530_v55 = vpop.f32.mrf.mxu2  ;;  %724 = vmatpush.bf16.msrb.mxu3 %v1100_v27 }
 0x1be   : > { %v542_v56 = vpack.c.bf16 %v530_v55, %v530_v55 }
 0x1c0   : > { %544 = vrot.lane.b32.xlu1 %v542_v56, %s1241_s16  ;;  %v615_v57 = vsel %vm613_vm6, %v542_v56, 0  ;;  %v1110_v56 = vld [vmem:[%s1553_s10 + $0x30] sm:$0xff] }
 0x1c1   : > { %624 = vmatpush.bf16.msra.mxu1 %v615_v57  ;;  %725 = vmatpush.bf16.msrb.mxu3 %v1099_v28  ;;  %v1159_v28 = vld [vmem:[%s1554_s11] ss:$0 sm:$0xff] }
 0x1c5   : > { %v532_v58 = vpop.f32.mrf.mxu2  ;;  %726 = vmatpush.bf16.msrb.mxu3 %v1098_v29  ;;  %884 = vmatpush.bf16.msrb.mxu1 %v1111_v53 }
 0x1c9   : > { %727 = vmatpush.bf16.msrb.mxu3 %v1097_v30  ;;  %885 = vmatpush.bf16.msrb.mxu1 %v1110_v56 }
 0x1cd   : > { %728 = vmatpush.bf16.msrb.mxu3 %v1096_v31 }
 0x1d1   : > { %729 = vmatpush.bf16.msrb.mxu3 %v1095_v33 }
 0x1d5   : > { %730 = vmatpush.bf16.msrb.mxu3 %v1094_v37 }
 0x222   : > { %v541_v59 = vpop.permute.xlu1 %540 }
 0x223   : > { %v570_v60 = vsel %vm546_vm5, %v541_v59, 0 }
 0x224   : > { %579 = vmatpush.bf16.xpose.msrb.mxu0 %v570_v60 }
 0x22a   : > { %v537_v61 = vpop.permute.xlu1 %536 }
 0x22b   : > { %1008 = vmatmul.msk.bf16.vlgmr.msrb.gmra.mxu0 %vm546_vm5, %v537_v61 }
 0x22c   : > { %799 = vmatpush.bf16.msra.mxu0 %v1103_v52 }
 0x232   : > { %v545_v62 = vpop.permute.xlu1 %544 }
 0x233   : > { %v634_v63 = vsel %vm613_vm6, %v545_v62, 0 }
 0x234   : > { %643 = vmatpush.bf16.msra.mxu2 %v634_v63 }
 0x23b   : > { %v562_v1 = vpop.f32.mrf.mxu3 }
 0x23c   : > { %v586_v6 = vsel %vm585_vm7, %v562_v1, -inf }
 0x243   : > { %v564_v2 = vpop.f32.mrf.mxu3 }
 0x2a8   : > { %v581_v3 = vpop.f32.mrf.mxu0 }
 0x2a9   : > { %v589_v4 = vsel %vm585_vm7, %v581_v3, -inf }
 0x2aa   : > { %590 = vmax.xlane.f32.xlu2 %v589_v4 }
 0x2b0   : > { %v583_v5 = vpop.f32.mrf.mxu0 }
 0x2b2   : > { %587 = vmax.xlane.f32.xlu2 %v586_v6 }
 0x31d   : > { %v591_v7 = vpop.xlane.xlu2 %590 }
 0x31e   : > { %v593_v9 = vsub.f32 %v581_v3, %v591_v7  ;;  %v1157_v3 = vld [vmem:[%s1550_s7] ss:$0 sm:$0xff]  ;;  %v1109_v7 = vld [vmem:[%s1553_s10 + $0x28] sm:$0xff] }
 0x31f   : > { %886 = vmatpush.bf16.msrb.mxu1 %v1109_v7 }
 0x320   : > { %v596_v10 = vmul.f32 1.442695, %v593_v9  ;;  %v1108_v9 = vld [vmem:[%s1553_s10 + $0x20] sm:$0xff] }
 0x322   : > { %1164 = vpow2.f32 %v596_v10  ;;  %v1107_v10 = vld [vmem:[%s1553_s10 + $0x18] sm:$0xff] }
 0x323   : > { %887 = vmatpush.bf16.msrb.mxu1 %v1108_v9 }
 0x325   : > { %v588_v11 = vpop.xlane.xlu2 %587 }
 0x326   : > { %v592_v12 = vsub.f32 %v562_v1, %v588_v11  ;;  %v1106_v11 = vld [vmem:[%s1553_s10 + $0x10] sm:$0xff] }
 0x327   : > { %888 = vmatpush.bf16.msrb.mxu1 %v1107_v10 }
 0x328   : > { %v1165_v13 = vpop.eup %1164  ;;  %v594_v14 = vmul.f32 1.442695, %v592_v12  ;;  %v1105_v12 = vld [vmem:[%s1553_s10 + $0x8] sm:$0xff] }
 0x329   : > { %v601_v15 = vsel %vm585_vm7, %v1165_v13, 0.0 }
 0x32a   : > { %1166 = vpow2.f32 %v594_v14  ;;  %602 = vadd.xlane.f32.xlu0 %v601_v15  ;;  %v1158_v14 = vld [vmem:[%s1552_s9] ss:$0 sm:$0xff] }
 0x32b   : > { %889 = vmatpush.bf16.msrb.mxu1 %v1106_v11 }
 0x32f   : > { %890 = vmatpush.bf16.msrb.mxu1 %v1105_v12 }
 0x330   : > { %v1167_v16 = vpop.eup %1166 }
 0x331   : > { %v598_v17 = vsel %vm585_vm7, %v1167_v16, 0.0 }
 0x332   : > { %599 = vadd.xlane.f32.xlu2 %v598_v17 }
 0x39d   : > { %v603_v18 = vpop.xlane.xlu0 %602 }
 0x39e   : > { %1168 = vrcp.f32 %v603_v18 }
 0x3a4   : > { %v1169_v19 = vpop.eup %1168 }
 0x3a5   : > { %v607_v20 = vmul.f32 %v1169_v19, %v1165_v13  ;;  %v600_v21 = vpop.xlane.xlu2 %599  ;;  %v1104_v13 = vld [vmem:[%s1553_s10] sm:$0xff] }
 0x3a6   : > { %1170 = vrcp.f32 %v600_v21  ;;  %891 = vmatpush.bf16.msrb.mxu1 %v1104_v13 }
 0x3a7   : > { %v609_v22 = vpack.c.bf16 %v607_v20, %v607_v20 }
 0x3a9   : > { %1010 = vmatmul.msk.bf16.vlgmr.msra.gmra.mxu2 %vm585_vm7, %v609_v22 }
 0x3ac   : > { %v1171_v23 = vpop.eup %1170 }
 0x3ad   : > { %v606_v24 = vmul.f32 %v1171_v23, %v1167_v16 }
 0x3af   : > { %v608_v25 = vpack.c.bf16 %v606_v24, %v606_v24 }
 0x3b1   : > { %1009 = vmatmul.msk.bf16.vlgmr.msra.gmra.mxu1 %vm585_vm7, %v608_v25 }
 0x42c   : > { %v645_v32 = vpop.f32.mrf.mxu2 }
 0x42d   : > { %650 = vrot.lane.b32.xlu0 %v645_v32, %s1241_s16  ;;  %s910_s16 = scalar_lea.hbm %s1555_s12, %s1085_s19 }
 0x42e   : > { %v626_v34 = vpop.f32.mrf.mxu1  ;;  %s914_s30 = sshll.u32 %s910_s16, 4  ;;  %s915_s30 = int_to_ptr.hbm [resolvable:$true] %s914_s30 }
 0x42f   : > { %s1190_s1 = sshra.s32 %s915_s30, 4  ;;  %s1191_s1 = int_to_ptr.hbm [resolvable:$true] %s1190_s1 }
 0x430   : > { %s1192_s20 = scalar_lea.hbm %s1191_s1, 8  ;;  %p1197_p0 = scmp.lt.s32.totalorder %s1191_s1, %s1555_s12 }
 0x431   : > { %p1193_p11 = scmp.ne.s32.totalorder %s1191_s1, %s1192_s20  ;;  %p1198_p1 = scmp.lt.s32.totalorder %s1196_s18, %s1192_s20 }
 0x433   : > { %p1194_p12 = pnand %p1193_p11, %p1345_p5  ;;  %p1199_p2 = por %p1198_p1, %p1197_p0 }
 0x434   : > { %v647_v35 = vpop.f32.mrf.mxu2 }
 0x435   : > { %p1195_p13 = pneg %p1194_p12 }
 0x436   : > { %v628_v36 = vpop.f32.mrf.mxu1 }
 0x437   : > { %p1200_p3 = pnand %p1199_p2, %p1195_p13 }
 0x49f   : > { %v651_v38 = vpop.permute.xlu0 %650 }
 0x4a0   : > { %v653_v39 = vsel %vm546_vm5, %v626_v34, %v651_v38 }
 0x4a1   : > { %v654_v40 = vpack.c.bf16 %v653_v39, %v653_v39 }
 0x4a3   : > { %731 = vmatmul.bf16.vlgmr.msrb.gmra.mxu3 %v654_v40 }
 0x526   : > { %v732_v42 = vpop.f32.mrf.mxu3 }
 0x527   : > { %v733_v43 = vadd.f32 %v1155_v41, %v732_v42 }
 0x529   : > { %v1458_v44 = vadd.f32 %v733_v43, %v1360_v0  ;;  %v1102_v0 = vld [vmem:[%s1551_s8] sm:$0xff] }
 0x52a   : > { %800 = vmatpush.bf16.msra.mxu0 %v1102_v0 }
 0x52b   : > { %v739_v45 = vsel %vm413_vm0, %v1458_v44, 0.0 }
 0x52c   : > { %740 = vadd.xlane.f32.xlu1 %v739_v45 }
 0x52e   : > { %v734_v46 = vpop.f32.mrf.mxu3 }
 0x59f   : > { %v741_v47 = vpop.xlane.xlu1 %740 }
 0x5a0   : > { %v742_v48 = vmul.f32 %v741_v47, %v1364_v8 }
 0x5a2   : > { %v743_v49 = vsub.f32 %v1458_v44, %v742_v48 }
 0x5a4   : > { %v744_v50 = vmul.f32 %v743_v49, %v743_v49 }
 0x5a6   : > { %v745_v51 = vsel %vm413_vm0, %v744_v50, 0.0 }
 0x5a7   : > { %746 = vadd.xlane.f32.xlu2 %v745_v51 }
 0x61a   : > { %v747_v54 = vpop.xlane.xlu2 %746 }
 0x61b   : > { %v748_v55 = vmul.f32 %v747_v54, %v1364_v8  ;;  %v1156_v8 = vld [vmem:[%s1549_s6] ss:$0 sm:$0xff] }
 0x61d   : > { %v749_v57 = vadd.f32 1e-05, %v748_v55 }
 0x61f   : > { %1172 = vrsqrt.f32 %v749_v57  ;;  %vm756_vm9 = vweird.f32 %v749_v57 }
 0x625   : > { %v1173_v58 = vpop.eup %1172 }
 0x626   : > { %v751_v59 = vmul.f32 %v1173_v58, %v749_v57  ;;  %vm757_vm8 = vweird.f32 %v1173_v58 }
 0x627   : > { %vm758_vm10 = vmor %vm756_vm9, %vm757_vm8 }
 0x628   : > { %v752_v60 = vmul.f32 %v1173_v58, %v751_v59 }
 0x62a   : > { %v753_v61 = vmul.f32 0.5, %v752_v60 }
 0x62c   : > { %v754_v62 = vsub.f32 1.5, %v753_v61 }
 0x62e   : > { %v755_v63 = vmul.f32 %v1173_v58, %v754_v62 }
 0x630   : > { %v759_v1 = vsel %vm758_vm10, %v1173_v58, %v755_v63 }
 0x631   : > { %v760_v2 = vmul.f32 %v759_v1, %v743_v49 }
 0x633   : > { %v764_v4 = vmul.f32 %v1156_v8, %v760_v2 }
 0x635   : > { %v768_v5 = vadd.f32 %v1157_v3, %v764_v4 }
 0x637   : > { %v769_v6 = vpack.c.bf16 %v768_v5, %v768_v5 }
 0x639   : > { %1051 = vmatmul.msk.bf16.vlgmr.msra.gmra.mxu0 %vm413_vm0, %v769_v6 }
 0x6b6   : > { %v802_v15 = vpop.f32.mrf.mxu0 }
 0x6b7   : > { %v803_v16 = vadd.f32 %v1158_v14, %v802_v15 }
 0x6b9   : > { %v807_v17 = vmul.f32 0.044715, %v803_v16  ;;  %v806_v24 = vmul.f32 0.5, %v803_v16 }
 0x6bb   : > { %v808_v18 = vmul.f32 %v807_v17, %v803_v16 }
 0x6bd   : > { %v809_v19 = vmul.f32 %v808_v18, %v803_v16 }
 0x6be   : > { %v804_v20 = vpop.f32.mrf.mxu0 }
 0x6bf   : > { %v810_v21 = vadd.f32 %v809_v19, %v803_v16 }
 0x6c1   : > { %v811_v22 = vmul.f32 0.7978846, %v810_v21 }
 0x6c3   : > { %1174 = vtanh.f32 %v811_v22 }
 0x6c9   : > { %v1175_v23 = vpop.eup %1174 }
 0x6ca   : > { %v813_v25 = vadd.f32 1.0, %v1175_v23 }
 0x6cc   : > { %v814_v26 = vmul.f32 %v813_v25, %v806_v24 }
 0x6ce   : > { %v815_v27 = vpack.c.bf16 %v814_v26, %v814_v26 }
 0x6d0   : > { %892 = vmatmul.bf16.vlgmr.msrb.gmra.mxu1 %v815_v27 }
 0x74d   : > { %v893_v29 = vpop.f32.mrf.mxu1 }
 0x74e   : > { %v894_v30 = vadd.f32 %v1159_v28, %v893_v29 }
 0x750   : > { %v897_v31 = vadd.f32 %v894_v30, %v1458_v44 }
 0x752   : > { %898 = vst.msk [vmem:[%s404_s15] sm:$0xff] %vm413_vm0, %v897_v31 }
 0x753   : > { %1203 = shalt.err (!%p1200_p3)
}
 0x754   : > { %1112 = dma.vmem_to_hbm [thread:$0]  (%p1345_p5), %s913_s0, 128, %s915_s30, %s900_s25  }
 0x755   : > { %v895_v32 = vpop.f32.mrf.mxu1 }
 0x756 PF: > { %p1118_p4 = scmp.ge.s32.totalorder %s1238_s24, 2  ;;  %s926_s17 = sand.u32 1, %s1226_s21  }
 0x757   : > { %s927_s16 = scalar_lea.sflag [#allocation3], %s926_s17 }
 0x758   : > { %p1115_p7 = pnand %p1118_p4, %p1349_p6 }
 0x75a   : > { %p1116_p8 = pneg %p1115_p7 }
 0x75c   : > { %1221 = dma.done.wait (%p1116_p8), %s927_s16, 128  }
 0x75d   : > { %1223 = vsyncadd (%p1116_p8), %s927_s16, 4294967168  ;;  %s1563_s1 = sld [smem:[#allocation5_spill]]  ;;  %p22_p9 = scmp.ge.s32.totalorder %s1332_s27, 4  }
 0x75e   : > { %s1564_s21 = smov %s1230_s22  ;;  %s1565_s22 = smov %s1234_s23 }
 0x75f   : > { %s1567_s24 = smov %s1332_s27  ;;  %24 = sbr.rel (!%p22_p9) target bundleno = 6 (0x6), region = 103 }
 0x763   : > { %s1566_s23 = smov %s1563_s1 }
 0x764   :  { %933 = vsyncpa [#allocation3], 1 }
 0x765   :  { %935 = vsyncpa [#allocation3 + $0x1], 1 }

</bundles_post_ra>
